<compile_context>
chip_gen: v5e
topology: v5e:2x2
jax: 0.10.0
libtpu: 0.0.40
codegen_flags: <defaults>
</compile_context>

<pallas_src>
import functools
import math

import jax
import jax.numpy as jnp
from jax.experimental import pallas as pl
from jax.experimental.pallas import tpu as pltpu

LANE = 128


def _round_up(n, m):
    return ((n + m - 1) // m) * m


def _pad_cols(a, width):
    pad = width - a.shape[-1]
    return a if pad == 0 else jnp.pad(a, ((0, 0), (0, pad)))


def _pad_rows(a, height):
    pad = height - a.shape[0]
    return a if pad == 0 else jnp.pad(a, ((0, pad), (0, 0)))


# ---------------------------------------------------------------------------
# In-kernel numerics (all elementwise math in f32)
# ---------------------------------------------------------------------------
def _stable_softplus(x):
    # softplus(x) = max(x, 0) + log1p(exp(-|x|)); never overflows.
    return jnp.maximum(x, 0.0) + jnp.log1p(jnp.exp(-jnp.abs(x)))


def _stable_sigmoid(x):
    # x>=0: 1/(1+e^-x); x<0: e^x/(1+e^x).  EUP exp + approx reciprocal,
    # clipped so outputs stay valid Bernoulli probabilities.
    e = jnp.exp(-jnp.abs(x))
    inv = pl.reciprocal(1.0 + e, approx=True)
    return jnp.clip(jnp.where(x >= 0.0, inv, e * inv), 0.0, 1.0)


def _encode(feat, cov, w_ef, w_ed, b_e, w_mulv, b_mulv, eps, lat_pad):
    """Encoder: two MXU pushes (feature + covariate) share the f32 accumulator
    (replaces the wrapper-side [x|dx] concat), one mu|lvar matmul whose two
    sections are each 128-lane aligned, then reparameterization.

    eps is zero-padded to lat_pad columns and the lvar padding columns are
    zero, so the padded z lanes are exactly zero (decoder K-padding is inert).
    """
    h = jnp.dot(feat, w_ef, preferred_element_type=jnp.float32)
    h = h + jnp.dot(cov, w_ed, preferred_element_type=jnp.float32)
    h = jnp.maximum(h + b_e, 0.0)
    mulv = jnp.dot(h, w_mulv, preferred_element_type=jnp.float32) + b_mulv
    mu = mulv[:, :lat_pad]          # lane-boundary-aligned slices (pure VPU)
    lv = mulv[:, lat_pad:]
    z = mu + jnp.exp(0.5 * lv) * eps
    return mu, lv, z


# ---------------------------------------------------------------------------
# Kernels
# ---------------------------------------------------------------------------
def _aligned_vae_kernel(
        x_ref, dx_ref, y_ref, dy_ref, eps_x_ref, eps_y_ref,
        wx_ef_ref, wx_ed_ref, bx_e_ref, wx_mulv_ref, bx_mulv_ref,
        wx_dz_ref, bx_dz_ref, wx_head_ref, bx_head_ref,
        wy_ef_ref, wy_ed_ref, by_e_ref, wy_mulv_ref, by_mulv_ref,
        wy_dz_ref, by_dz_ref, wy_rec_ref, by_rec_ref,
        mu_x_ref, lv_x_ref, z_x_ref, theta_ref, rate_ref, drop_ref,
        mu_y_ref, lv_y_ref, z_y_ref, rec_y_ref,
        *, lat_pad, x_pad):
    # ------------------------- sub-VAE X (ZINB heads) -------------------------
    mu_x, lv_x, z_x = _encode(x_ref[...], dx_ref[...],
                              wx_ef_ref[...], wx_ed_ref[...], bx_e_ref[...],
                              wx_mulv_ref[...], bx_mulv_ref[...],
                              eps_x_ref[...], lat_pad)
    mu_x_ref[...] = mu_x
    lv_x_ref[...] = lv_x
    z_x_ref[...] = z_x

    hd_x = jnp.maximum(
        jnp.dot(z_x, wx_dz_ref[...], preferred_element_type=jnp.float32)
        + bx_dz_ref[...], 0.0)
    # one fused (hidden, 3*pad128(X)) head matmul: theta | rate | dropout,
    # each section 128-lane aligned; activations applied per section only.
    pre_x = jnp.dot(hd_x, wx_head_ref[...],
                    preferred_element_type=jnp.float32) + bx_head_ref[...]
    theta_ref[...] = _stable_softplus(pre_x[:, :x_pad])
    rate_ref[...] = jnp.exp(jnp.clip(pre_x[:, x_pad:2 * x_pad], -30.0, 30.0))
    # ZINB dropout head returned as raw logits (scVI convention) — intentional.
    drop_ref[...] = pre_x[:, 2 * x_pad:]

    # ----------------------- sub-VAE Y (Bernoulli head) -----------------------
    mu_y, lv_y, z_y = _encode(y_ref[...], dy_ref[...],
                              wy_ef_ref[...], wy_ed_ref[...], by_e_ref[...],
                              wy_mulv_ref[...], by_mulv_ref[...],
                              eps_y_ref[...], lat_pad)
    mu_y_ref[...] = mu_y
    lv_y_ref[...] = lv_y
    z_y_ref[...] = z_y

    hd_y = jnp.maximum(
        jnp.dot(z_y, wy_dz_ref[...], preferred_element_type=jnp.float32)
        + by_dz_ref[...], 0.0)
    pre_y = jnp.dot(hd_y, wy_rec_ref[...],
                    preferred_element_type=jnp.float32) + by_rec_ref[...]
    rec_y_ref[...] = _stable_sigmoid(pre_y)


def _aligned_vae_norec_kernel(
        x_ref, dx_ref, y_ref, dy_ref,
        wx_ef_ref, wx_ed_ref, bx_e_ref, wx_mu_ref, bx_mu_ref,
        wy_ef_ref, wy_ed_ref, by_e_ref, wy_mu_ref, by_mu_ref,
        mu_x_ref, mu_y_ref):
    # Encoder-only path: only the mu half of the latent head is passed in, so
    # the second matmul and the writeback are half-width full-lane stores.
    for feat, cov, wef, wed, be, wm, bm, out in (
            (x_ref, dx_ref, wx_ef_ref, wx_ed_ref, bx_e_ref, wx_mu_ref,
             bx_mu_ref, mu_x_ref),
            (y_ref, dy_ref, wy_ef_ref, wy_ed_ref, by_e_ref, wy_mu_ref,
             by_mu_ref, mu_y_ref)):
        h = jnp.dot(feat[...], wef[...], preferred_element_type=jnp.float32)
        h = h + jnp.dot(cov[...], wed[...], preferred_element_type=jnp.float32)
        h = jnp.maximum(h + be[...], 0.0)
        out[...] = jnp.dot(h, wm[...],
                           preferred_element_type=jnp.float32) + bm[...]


# ---------------------------------------------------------------------------
# Wrapper
# ---------------------------------------------------------------------------
def _vmem_specs(n):
    return [pl.BlockSpec(memory_space=pltpu.MemorySpace.VMEM)
            for _ in range(n)]


def _nbytes(a):
    return math.prod(a.shape) * jnp.dtype(a.dtype).itemsize


def aligned_vae_forward(x, y, dx, dy, eps_x, eps_y, params_x, params_y,
                        b=None, no_rec=False):
    """Mirrors AlignedVAE.forward branching; one fused pallas_call per branch."""
    B, X, Y = x.shape[0], x.shape[1], y.shape[1]
    L = eps_x.shape[1]
    H = params_x["w_ef"].shape[1]
    lat_pad = params_x["w_mulv"].shape[1] // 2      # round_up(L, 128)
    x_pad = params_x["w_head"].shape[1] // 3        # round_up(X, 128)
    y_pad = params_y["w_rec"].shape[1]              # round_up(Y, 128)

    if no_rec:
        args = (x, dx, y, dy,
                params_x["w_ef"], params_x["w_ed"], params_x["b_e"],
                params_x["w_mu_only"], params_x["b_mu_only"],
                params_y["w_ef"], params_y["w_ed"], params_y["b_e"],
                params_y["w_mu_only"], params_y["b_mu_only"])
        outs = (jax.ShapeDtypeStruct((B, lat_pad), jnp.float32),
                jax.ShapeDtypeStruct((B, lat_pad), jnp.float32))
        flops = 2 * B * ((X + dx.shape[1] + Y + dy.shape[1]) * H
                         + 2 * H * lat_pad)
        ce = pl.CostEstimate(
            flops=int(flops), transcendentals=0,
            bytes_accessed=int(sum(_nbytes(a) for a in args)
                               + sum(_nbytes(o) for o in outs)))
        mu_x, mu_y = pl.pallas_call(
            _aligned_vae_norec_kernel,
            out_shape=outs,
            in_specs=_vmem_specs(len(args)),
            out_specs=tuple(_vmem_specs(len(outs))),
            cost_estimate=ce,
        )(*args)
        return mu_x[:, :L], mu_y[:, :L]

    # TODO(synk): the `b is not None` branch passes an extra batch covariate
    # into the (unspecified) sub-VAEs; its semantics are not defined in the
    # reference, so it is handled identically to the default branch here.
    eps_xp = _pad_cols(eps_x, lat_pad)   # zero padding -> z padding lanes == 0
    eps_yp = _pad_cols(eps_y, lat_pad)

    args = (x, dx, y, dy, eps_xp, eps_yp,
            params_x["w_ef"], params_x["w_ed"], params_x["b_e"],
            params_x["w_mulv"], params_x["b_mulv"],
            params_x["w_dz"], params_x["b_dz"],
            params_x["w_head"], params_x["b_head"],
            params_y["w_ef"], params_y["w_ed"], params_y["b_e"],
            params_y["w_mulv"], params_y["b_mulv"],
            params_y["w_dz"], params_y["b_dz"],
            params_y["w_rec"], params_y["b_rec"])
    outs = (jax.ShapeDtypeStruct((B, lat_pad), jnp.float32),   # mu_x
            jax.ShapeDtypeStruct((B, lat_pad), jnp.float32),   # lvar_x
            jax.ShapeDtypeStruct((B, lat_pad), jnp.float32),   # z_x
            jax.ShapeDtypeStruct((B, x_pad), jnp.float32),     # theta
            jax.ShapeDtypeStruct((B, x_pad), jnp.float32),     # rate
            jax.ShapeDtypeStruct((B, x_pad), jnp.float32),     # dropout logits
            jax.ShapeDtypeStruct((B, lat_pad), jnp.float32),   # mu_y
            jax.ShapeDtypeStruct((B, lat_pad), jnp.float32),   # lvar_y
            jax.ShapeDtypeStruct((B, lat_pad), jnp.float32),   # z_y
            jax.ShapeDtypeStruct((B, y_pad), jnp.float32))     # y_rec

    flops = 2 * B * (
        (X + dx.shape[1]) * H + 2 * H * lat_pad + lat_pad * H + 3 * H * x_pad
        + (Y + dy.shape[1]) * H + 2 * H * lat_pad + lat_pad * H + H * y_pad)
    trans = B * (2 * lat_pad + 3 * x_pad + 2 * y_pad)
    ce = pl.CostEstimate(
        flops=int(flops), transcendentals=int(trans),
        bytes_accessed=int(sum(_nbytes(a) for a in args)
                           + sum(_nbytes(o) for o in outs)))

    (mu_x, lv_x, z_x, theta, rate, drop,
     mu_y, lv_y, z_y, rec_y) = pl.pallas_call(
        functools.partial(_aligned_vae_kernel, lat_pad=lat_pad, x_pad=x_pad),
        out_shape=outs,
        in_specs=_vmem_specs(len(args)),
        out_specs=tuple(_vmem_specs(len(outs))),
        cost_estimate=ce,
    )(*args)

    x_out = (mu_x[:, :L], lv_x[:, :L], z_x[:, :L],
             theta[:, :X], rate[:, :X], drop[:, :X])
    y_out = (mu_y[:, :L], lv_y[:, :L], z_y[:, :L], rec_y[:, :Y])
    return x_out, y_out


# ---------------------------------------------------------------------------
# Deterministic parameter construction + kernel-friendly fusion
# ---------------------------------------------------------------------------
def _init_vae_x_params(key, x_dim, d_dim, hidden, latent):
    ks = jax.random.split(key, 9)
    s = 0.05
    return {
        "w_ex": s * jax.random.normal(ks[0], (x_dim, hidden), jnp.float32),
        "w_ed": s * jax.random.normal(ks[1], (d_dim, hidden), jnp.float32),
        "b_e": jnp.zeros((1, hidden), jnp.float32),
        "w_mu": s * jax.random.normal(ks[2], (hidden, latent), jnp.float32),
        "b_mu": jnp.zeros((1, latent), jnp.float32),
        "w_lv": s * jax.random.normal(ks[3], (hidden, latent), jnp.float32),
        "b_lv": jnp.zeros((1, latent), jnp.float32),
        "w_dz": s * jax.random.normal(ks[4], (latent, hidden), jnp.float32),
        "b_dz": jnp.zeros((1, hidden), jnp.float32),
        "w_th": s * jax.random.normal(ks[5], (hidden, x_dim), jnp.float32),
        "b_th": jnp.zeros((1, x_dim), jnp.float32),
        "w_r": s * jax.random.normal(ks[6], (hidden, x_dim), jnp.float32),
        "b_r": jnp.zeros((1, x_dim), jnp.float32),
        "w_do": s * jax.random.normal(ks[7], (hidden, x_dim), jnp.float32),
        "b_do": jnp.zeros((1, x_dim), jnp.float32),
    }


def _init_vae_y_params(key, y_dim, d_dim, hidden, latent):
    ks = jax.random.split(key, 7)
    s = 0.05
    return {
        "w_ey": s * jax.random.normal(ks[0], (y_dim, hidden), jnp.float32),
        "w_ed": s * jax.random.normal(ks[1], (d_dim, hidden), jnp.float32),
        "b_e": jnp.zeros((1, hidden), jnp.float32),
        "w_mu": s * jax.random.normal(ks[2], (hidden, latent), jnp.float32),
        "b_mu": jnp.zeros((1, latent), jnp.float32),
        "w_lv": s * jax.random.normal(ks[3], (hidden, latent), jnp.float32),
        "b_lv": jnp.zeros((1, latent), jnp.float32),
        "w_dz": s * jax.random.normal(ks[4], (latent, hidden), jnp.float32),
        "b_dz": jnp.zeros((1, hidden), jnp.float32),
        "w_rec": s * jax.random.normal(ks[5], (hidden, y_dim), jnp.float32),
        "b_rec": jnp.zeros((1, y_dim), jnp.float32),
    }


def fuse_vae_x_params(p):
    """Fuse per-head weights with PER-SECTION 128-lane alignment:
    mu|lvar each padded to round_up(L,128); theta|rate|dropout each padded to
    round_up(X,128).  All slices inside the kernel then fall on vreg lane
    boundaries.  f32 everywhere at toy sizes (no bf16 pack/precision cost).
    TODO(synk): bf16 weights + N-tiled streamed BlockSpecs for realistic X."""
    latent = p["w_mu"].shape[1]
    x_dim = p["w_th"].shape[1]
    Lp = _round_up(latent, LANE)
    Xp = _round_up(x_dim, LANE)
    return {
        "w_ef": p["w_ex"],
        "w_ed": p["w_ed"],
        "b_e": p["b_e"],
        "w_mulv": jnp.concatenate(
            [_pad_cols(p["w_mu"], Lp), _pad_cols(p["w_lv"], Lp)], axis=1),
        "b_mulv": jnp.concatenate(
            [_pad_cols(p["b_mu"], Lp), _pad_cols(p["b_lv"], Lp)], axis=1),
        "w_mu_only": _pad_cols(p["w_mu"], Lp),     # no_rec half-width path
        "b_mu_only": _pad_cols(p["b_mu"], Lp),
        "w_dz": _pad_rows(p["w_dz"], Lp),          # inert K-padding rows
        "b_dz": p["b_dz"],
        "w_head": jnp.concatenate(
            [_pad_cols(p["w_th"], Xp), _pad_cols(p["w_r"], Xp),
             _pad_cols(p["w_do"], Xp)], axis=1),
        "b_head": jnp.concatenate(
            [_pad_cols(p["b_th"], Xp), _pad_cols(p["b_r"], Xp),
             _pad_cols(p["b_do"], Xp)], axis=1),
    }


def fuse_vae_y_params(p):
    latent = p["w_mu"].shape[1]
    y_dim = p["w_rec"].shape[1]
    Lp = _round_up(latent, LANE)
    Yp = _round_up(y_dim, LANE)
    return {
        "w_ef": p["w_ey"],
        "w_ed": p["w_ed"],
        "b_e": p["b_e"],
        "w_mulv": jnp.concatenate(
            [_pad_cols(p["w_mu"], Lp), _pad_cols(p["w_lv"], Lp)], axis=1),
        "b_mulv": jnp.concatenate(
            [_pad_cols(p["b_mu"], Lp), _pad_cols(p["b_lv"], Lp)], axis=1),
        "w_mu_only": _pad_cols(p["w_mu"], Lp),
        "b_mu_only": _pad_cols(p["b_mu"], Lp),
        "w_dz": _pad_rows(p["w_dz"], Lp),
        "b_dz": p["b_dz"],
        "w_rec": _pad_cols(p["w_rec"], Yp),
        "b_rec": _pad_cols(p["b_rec"], Yp),
    }


# ---------------------------------------------------------------------------
# Main
# ---------------------------------------------------------------------------
if __name__ == "__main__":
    B, X_DIM, Y_DIM, DX_DIM, DY_DIM, HIDDEN, LATENT = 8, 32, 32, 8, 8, 32, 16

    root = jax.random.PRNGKey(0)
    k_x, k_y, k_dx, k_dy, k_ex, k_ey, k_px, k_py = jax.random.split(root, 8)

    x = jax.random.normal(k_x, (B, X_DIM), jnp.float32)
    y = jax.random.normal(k_y, (B, Y_DIM), jnp.float32)
    dx = jax.random.normal(k_dx, (B, DX_DIM), jnp.float32)
    dy = jax.random.normal(k_dy, (B, DY_DIM), jnp.float32)
    eps_x = jax.random.normal(k_ex, (B, LATENT), jnp.float32)
    eps_y = jax.random.normal(k_ey, (B, LATENT), jnp.float32)

    params_x = fuse_vae_x_params(
        _init_vae_x_params(k_px, X_DIM, DX_DIM, HIDDEN, LATENT))
    params_y = fuse_vae_y_params(
        _init_vae_y_params(k_py, Y_DIM, DY_DIM, HIDDEN, LATENT))

    forward = jax.jit(aligned_vae_forward, static_argnames=("no_rec",))

    x_out, y_out = forward(x, y, dx, dy, eps_x, eps_y, params_x, params_y)
    x_mean, x_lvar, z_x, theta, rate, dropout = x_out
    y_mean, y_lvar, z_y, y_rec = y_out
    jax.block_until_ready((x_mean, x_lvar, z_x, theta, rate, dropout,
                           y_mean, y_lvar, z_y, y_rec))

    # sanity: shapes match the PyTorch return contract
    assert x_mean.shape == (B, LATENT) and x_lvar.shape == (B, LATENT)
    assert z_x.shape == (B, LATENT)
    assert theta.shape == (B, X_DIM) and rate.shape == (B, X_DIM)
    assert dropout.shape == (B, X_DIM)
    assert y_mean.shape == (B, LATENT) and y_lvar.shape == (B, LATENT)
    assert z_y.shape == (B, LATENT) and y_rec.shape == (B, Y_DIM)

    # sanity: distribution heads land in valid ranges
    assert bool(jnp.all(theta > 0.0)) and bool(jnp.all(rate > 0.0))
    assert bool(jnp.all((y_rec >= 0.0) & (y_rec <= 1.0)))

    # no_rec branch: encoder-only kernel, mu-only half-width head, decoder
    # compute / DMA skipped entirely.
    xm, ym = forward(x, y, dx, dy, eps_x, eps_y, params_x, params_y,
                     no_rec=True)
    jax.block_until_ready((xm, ym))
    assert xm.shape == (B, LATENT) and ym.shape == (B, LATENT)

    print("KERNEL_OK")
</pallas_src>

<mosaic_0001>
module attributes {stable_mosaic.version = 11 : i64} {
  func.func @_aligned_vae_kernel(%arg0: memref<8x32xf32, #tpu.memory_space<vmem>>, %arg1: memref<8x8xf32, #tpu.memory_space<vmem>>, %arg2: memref<8x32xf32, #tpu.memory_space<vmem>>, %arg3: memref<8x8xf32, #tpu.memory_space<vmem>>, %arg4: memref<8x128xf32, #tpu.memory_space<vmem>>, %arg5: memref<8x128xf32, #tpu.memory_space<vmem>>, %arg6: memref<32x32xf32, #tpu.memory_space<vmem>>, %arg7: memref<8x32xf32, #tpu.memory_space<vmem>>, %arg8: memref<1x32xf32, #tpu.memory_space<vmem>>, %arg9: memref<32x256xf32, #tpu.memory_space<vmem>>, %arg10: memref<1x256xf32, #tpu.memory_space<vmem>>, %arg11: memref<128x32xf32, #tpu.memory_space<vmem>>, %arg12: memref<1x32xf32, #tpu.memory_space<vmem>>, %arg13: memref<32x384xf32, #tpu.memory_space<vmem>>, %arg14: memref<1x384xf32, #tpu.memory_space<vmem>>, %arg15: memref<32x32xf32, #tpu.memory_space<vmem>>, %arg16: memref<8x32xf32, #tpu.memory_space<vmem>>, %arg17: memref<1x32xf32, #tpu.memory_space<vmem>>, %arg18: memref<32x256xf32, #tpu.memory_space<vmem>>, %arg19: memref<1x256xf32, #tpu.memory_space<vmem>>, %arg20: memref<128x32xf32, #tpu.memory_space<vmem>>, %arg21: memref<1x32xf32, #tpu.memory_space<vmem>>, %arg22: memref<32x128xf32, #tpu.memory_space<vmem>>, %arg23: memref<1x128xf32, #tpu.memory_space<vmem>>, %arg24: memref<8x128xf32, #tpu.memory_space<vmem>>, %arg25: memref<8x128xf32, #tpu.memory_space<vmem>>, %arg26: memref<8x128xf32, #tpu.memory_space<vmem>>, %arg27: memref<8x128xf32, #tpu.memory_space<vmem>>, %arg28: memref<8x128xf32, #tpu.memory_space<vmem>>, %arg29: memref<8x128xf32, #tpu.memory_space<vmem>>, %arg30: memref<8x128xf32, #tpu.memory_space<vmem>>, %arg31: memref<8x128xf32, #tpu.memory_space<vmem>>, %arg32: memref<8x128xf32, #tpu.memory_space<vmem>>, %arg33: memref<8x128xf32, #tpu.memory_space<vmem>>) attributes {dimension_semantics = [], scalar_prefetch = 0 : i64, scratch_operands = 0 : i64, tpu.core_type = #tpu.core_type<tc>} {
    %c0 = arith.constant 0 : index
    %c0_0 = arith.constant 0 : index
    %0 = vector.load %arg0[%c0, %c0_0] : memref<8x32xf32, #tpu.memory_space<vmem>>, vector<8x32xf32>
    %c0_1 = arith.constant 0 : index
    %c0_2 = arith.constant 0 : index
    %1 = vector.load %arg1[%c0_1, %c0_2] : memref<8x8xf32, #tpu.memory_space<vmem>>, vector<8x8xf32>
    %c0_3 = arith.constant 0 : index
    %c0_4 = arith.constant 0 : index
    %2 = vector.load %arg6[%c0_3, %c0_4] : memref<32x32xf32, #tpu.memory_space<vmem>>, vector<32x32xf32>
    %c0_5 = arith.constant 0 : index
    %c0_6 = arith.constant 0 : index
    %3 = vector.load %arg7[%c0_5, %c0_6] : memref<8x32xf32, #tpu.memory_space<vmem>>, vector<8x32xf32>
    %c0_7 = arith.constant 0 : index
    %c0_8 = arith.constant 0 : index
    %4 = vector.load %arg8[%c0_7, %c0_8] : memref<1x32xf32, #tpu.memory_space<vmem>>, vector<1x32xf32>
    %c0_9 = arith.constant 0 : index
    %c0_10 = arith.constant 0 : index
    %5 = vector.load %arg9[%c0_9, %c0_10] : memref<32x256xf32, #tpu.memory_space<vmem>>, vector<32x256xf32>
    %c0_11 = arith.constant 0 : index
    %c0_12 = arith.constant 0 : index
    %6 = vector.load %arg10[%c0_11, %c0_12] : memref<1x256xf32, #tpu.memory_space<vmem>>, vector<1x256xf32>
    %c0_13 = arith.constant 0 : index
    %c0_14 = arith.constant 0 : index
    %7 = vector.load %arg4[%c0_13, %c0_14] : memref<8x128xf32, #tpu.memory_space<vmem>>, vector<8x128xf32>
    %cst = arith.constant dense<0.000000e+00> : vector<8x32xf32>
    %8 = tpu.matmul %0, %2, %cst {dimension_numbers = #tpu.dot_dimension_numbers<[1], [0], [0], [1], [0, 0, 1, 1], [], []>} : vector<8x32xf32>, vector<32x32xf32>, vector<8x32xf32> -> vector<8x32xf32>
    %cst_15 = arith.constant dense<0.000000e+00> : vector<8x32xf32>
    %9 = tpu.matmul %1, %3, %cst_15 {dimension_numbers = #tpu.dot_dimension_numbers<[1], [0], [0], [1], [0, 0, 1, 1], [], []>} : vector<8x8xf32>, vector<8x32xf32>, vector<8x32xf32> -> vector<8x32xf32>
    %10 = arith.addf %8, %9 : vector<8x32xf32>
    %11 = vector.broadcast %4 : vector<1x32xf32> to vector<8x32xf32>
    %12 = arith.addf %10, %11 : vector<8x32xf32>
    %cst_16 = arith.constant 0.000000e+00 : f32
    %13 = vector.broadcast %cst_16 : f32 to vector<8x32xf32>
    %14 = arith.maximumf %12, %13 : vector<8x32xf32>
    %cst_17 = arith.constant dense<0.000000e+00> : vector<8x256xf32>
    %15 = tpu.matmul %14, %5, %cst_17 {dimension_numbers = #tpu.dot_dimension_numbers<[1], [0], [0], [1], [0, 0, 1, 1], [], []>} : vector<8x32xf32>, vector<32x256xf32>, vector<8x256xf32> -> vector<8x256xf32>
    %16 = vector.broadcast %6 : vector<1x256xf32> to vector<8x256xf32>
    %17 = arith.addf %15, %16 : vector<8x256xf32>
    %18 = vector.extract_strided_slice %17 {offsets = [0, 0], sizes = [8, 128], strides = [1, 1]} : vector<8x256xf32> to vector<8x128xf32>
    %19 = vector.extract_strided_slice %17 {offsets = [0, 128], sizes = [8, 128], strides = [1, 1]} : vector<8x256xf32> to vector<8x128xf32>
    %cst_18 = arith.constant 5.000000e-01 : f32
    %20 = vector.broadcast %cst_18 : f32 to vector<8x128xf32>
    %21 = arith.mulf %20, %19 : vector<8x128xf32>
    %22 = math.exp %21 : vector<8x128xf32>
    %23 = arith.mulf %22, %7 : vector<8x128xf32>
    %24 = arith.addf %18, %23 : vector<8x128xf32>
    %c0_19 = arith.constant 0 : index
    %c0_20 = arith.constant 0 : index
    %25 = vector.load %arg24[%c0_19, %c0_20] : memref<8x128xf32, #tpu.memory_space<vmem>>, vector<8x128xf32>
    tpu.vector_store %arg24[%c0_19, %c0_20], %18 {strides = array<i32>} : memref<8x128xf32, #tpu.memory_space<vmem>>, vector<8x128xf32>,
    %c0_21 = arith.constant 0 : index
    %c0_22 = arith.constant 0 : index
    %26 = vector.load %arg25[%c0_21, %c0_22] : memref<8x128xf32, #tpu.memory_space<vmem>>, vector<8x128xf32>
    tpu.vector_store %arg25[%c0_21, %c0_22], %19 {strides = array<i32>} : memref<8x128xf32, #tpu.memory_space<vmem>>, vector<8x128xf32>,
    %c0_23 = arith.constant 0 : index
    %c0_24 = arith.constant 0 : index
    %27 = vector.load %arg26[%c0_23, %c0_24] : memref<8x128xf32, #tpu.memory_space<vmem>>, vector<8x128xf32>
    tpu.vector_store %arg26[%c0_23, %c0_24], %24 {strides = array<i32>} : memref<8x128xf32, #tpu.memory_space<vmem>>, vector<8x128xf32>,
    %c0_25 = arith.constant 0 : index
    %c0_26 = arith.constant 0 : index
    %28 = vector.load %arg11[%c0_25, %c0_26] : memref<128x32xf32, #tpu.memory_space<vmem>>, vector<128x32xf32>
    %cst_27 = arith.constant dense<0.000000e+00> : vector<8x32xf32>
    %29 = tpu.matmul %24, %28, %cst_27 {dimension_numbers = #tpu.dot_dimension_numbers<[1], [0], [0], [1], [0, 0, 1, 1], [], []>} : vector<8x128xf32>, vector<128x32xf32>, vector<8x32xf32> -> vector<8x32xf32>
    %c0_28 = arith.constant 0 : index
    %c0_29 = arith.constant 0 : index
    %30 = vector.load %arg12[%c0_28, %c0_29] : memref<1x32xf32, #tpu.memory_space<vmem>>, vector<1x32xf32>
    %31 = vector.broadcast %30 : vector<1x32xf32> to vector<8x32xf32>
    %32 = arith.addf %29, %31 : vector<8x32xf32>
    %cst_30 = arith.constant 0.000000e+00 : f32
    %33 = vector.broadcast %cst_30 : f32 to vector<8x32xf32>
    %34 = arith.maximumf %32, %33 : vector<8x32xf32>
    %c0_31 = arith.constant 0 : index
    %c0_32 = arith.constant 0 : index
    %35 = vector.load %arg13[%c0_31, %c0_32] : memref<32x384xf32, #tpu.memory_space<vmem>>, vector<32x384xf32>
    %cst_33 = arith.constant dense<0.000000e+00> : vector<8x384xf32>
    %36 = tpu.matmul %34, %35, %cst_33 {dimension_numbers = #tpu.dot_dimension_numbers<[1], [0], [0], [1], [0, 0, 1, 1], [], []>} : vector<8x32xf32>, vector<32x384xf32>, vector<8x384xf32> -> vector<8x384xf32>
    %c0_34 = arith.constant 0 : index
    %c0_35 = arith.constant 0 : index
    %37 = vector.load %arg14[%c0_34, %c0_35] : memref<1x384xf32, #tpu.memory_space<vmem>>, vector<1x384xf32>
    %38 = vector.broadcast %37 : vector<1x384xf32> to vector<8x384xf32>
    %39 = arith.addf %36, %38 : vector<8x384xf32>
    %40 = vector.extract_strided_slice %39 {offsets = [0, 0], sizes = [8, 128], strides = [1, 1]} : vector<8x384xf32> to vector<8x128xf32>
    %cst_36 = arith.constant 0.000000e+00 : f32
    %41 = vector.broadcast %cst_36 : f32 to vector<8x128xf32>
    %42 = arith.maximumf %40, %41 : vector<8x128xf32>
    %43 = math.absf %40 : vector<8x128xf32>
    %cst_37 = arith.constant 0.000000e+00 : f32
    %44 = vector.broadcast %cst_37 : f32 to vector<8x128xf32>
    %45 = arith.subf %44, %43 : vector<8x128xf32>
    %46 = math.exp %45 : vector<8x128xf32>
    %47 = math.log1p %46 : vector<8x128xf32>
    %48 = arith.addf %42, %47 : vector<8x128xf32>
    %c0_38 = arith.constant 0 : index
    %c0_39 = arith.constant 0 : index
    %49 = vector.load %arg27[%c0_38, %c0_39] : memref<8x128xf32, #tpu.memory_space<vmem>>, vector<8x128xf32>
    tpu.vector_store %arg27[%c0_38, %c0_39], %48 {strides = array<i32>} : memref<8x128xf32, #tpu.memory_space<vmem>>, vector<8x128xf32>,
    %50 = vector.extract_strided_slice %39 {offsets = [0, 128], sizes = [8, 128], strides = [1, 1]} : vector<8x384xf32> to vector<8x128xf32>
    %cst_40 = arith.constant -3.000000e+01 : f32
    %cst_41 = arith.constant 3.000000e+01 : f32
    %51 = vector.broadcast %cst_40 : f32 to vector<8x128xf32>
    %52 = arith.maximumf %51, %50 : vector<8x128xf32>
    %53 = vector.broadcast %cst_41 : f32 to vector<8x128xf32>
    %54 = arith.minimumf %53, %52 : vector<8x128xf32>
    %55 = math.exp %54 : vector<8x128xf32>
    %c0_42 = arith.constant 0 : index
    %c0_43 = arith.constant 0 : index
    %56 = vector.load %arg28[%c0_42, %c0_43] : memref<8x128xf32, #tpu.memory_space<vmem>>, vector<8x128xf32>
    tpu.vector_store %arg28[%c0_42, %c0_43], %55 {strides = array<i32>} : memref<8x128xf32, #tpu.memory_space<vmem>>, vector<8x128xf32>,
    %57 = vector.extract_strided_slice %39 {offsets = [0, 256], sizes = [8, 128], strides = [1, 1]} : vector<8x384xf32> to vector<8x128xf32>
    %c0_44 = arith.constant 0 : index
    %c0_45 = arith.constant 0 : index
    %58 = vector.load %arg29[%c0_44, %c0_45] : memref<8x128xf32, #tpu.memory_space<vmem>>, vector<8x128xf32>
    tpu.vector_store %arg29[%c0_44, %c0_45], %57 {strides = array<i32>} : memref<8x128xf32, #tpu.memory_space<vmem>>, vector<8x128xf32>,
    %c0_46 = arith.constant 0 : index
    %c0_47 = arith.constant 0 : index
    %59 = vector.load %arg2[%c0_46, %c0_47] : memref<8x32xf32, #tpu.memory_space<vmem>>, vector<8x32xf32>
    %c0_48 = arith.constant 0 : index
    %c0_49 = arith.constant 0 : index
    %60 = vector.load %arg3[%c0_48, %c0_49] : memref<8x8xf32, #tpu.memory_space<vmem>>, vector<8x8xf32>
    %c0_50 = arith.constant 0 : index
    %c0_51 = arith.constant 0 : index
    %61 = vector.load %arg15[%c0_50, %c0_51] : memref<32x32xf32, #tpu.memory_space<vmem>>, vector<32x32xf32>
    %c0_52 = arith.constant 0 : index
    %c0_53 = arith.constant 0 : index
    %62 = vector.load %arg16[%c0_52, %c0_53] : memref<8x32xf32, #tpu.memory_space<vmem>>, vector<8x32xf32>
    %c0_54 = arith.constant 0 : index
    %c0_55 = arith.constant 0 : index
    %63 = vector.load %arg17[%c0_54, %c0_55] : memref<1x32xf32, #tpu.memory_space<vmem>>, vector<1x32xf32>
    %c0_56 = arith.constant 0 : index
    %c0_57 = arith.constant 0 : index
    %64 = vector.load %arg18[%c0_56, %c0_57] : memref<32x256xf32, #tpu.memory_space<vmem>>, vector<32x256xf32>
    %c0_58 = arith.constant 0 : index
    %c0_59 = arith.constant 0 : index
    %65 = vector.load %arg19[%c0_58, %c0_59] : memref<1x256xf32, #tpu.memory_space<vmem>>, vector<1x256xf32>
    %c0_60 = arith.constant 0 : index
    %c0_61 = arith.constant 0 : index
    %66 = vector.load %arg5[%c0_60, %c0_61] : memref<8x128xf32, #tpu.memory_space<vmem>>, vector<8x128xf32>
    %cst_62 = arith.constant dense<0.000000e+00> : vector<8x32xf32>
    %67 = tpu.matmul %59, %61, %cst_62 {dimension_numbers = #tpu.dot_dimension_numbers<[1], [0], [0], [1], [0, 0, 1, 1], [], []>} : vector<8x32xf32>, vector<32x32xf32>, vector<8x32xf32> -> vector<8x32xf32>
    %cst_63 = arith.constant dense<0.000000e+00> : vector<8x32xf32>
    %68 = tpu.matmul %60, %62, %cst_63 {dimension_numbers = #tpu.dot_dimension_numbers<[1], [0], [0], [1], [0, 0, 1, 1], [], []>} : vector<8x8xf32>, vector<8x32xf32>, vector<8x32xf32> -> vector<8x32xf32>
    %69 = arith.addf %67, %68 : vector<8x32xf32>
    %70 = vector.broadcast %63 : vector<1x32xf32> to vector<8x32xf32>
    %71 = arith.addf %69, %70 : vector<8x32xf32>
    %cst_64 = arith.constant 0.000000e+00 : f32
    %72 = vector.broadcast %cst_64 : f32 to vector<8x32xf32>
    %73 = arith.maximumf %71, %72 : vector<8x32xf32>
    %cst_65 = arith.constant dense<0.000000e+00> : vector<8x256xf32>
    %74 = tpu.matmul %73, %64, %cst_65 {dimension_numbers = #tpu.dot_dimension_numbers<[1], [0], [0], [1], [0, 0, 1, 1], [], []>} : vector<8x32xf32>, vector<32x256xf32>, vector<8x256xf32> -> vector<8x256xf32>
    %75 = vector.broadcast %65 : vector<1x256xf32> to vector<8x256xf32>
    %76 = arith.addf %74, %75 : vector<8x256xf32>
    %77 = vector.extract_strided_slice %76 {offsets = [0, 0], sizes = [8, 128], strides = [1, 1]} : vector<8x256xf32> to vector<8x128xf32>
    %78 = vector.extract_strided_slice %76 {offsets = [0, 128], sizes = [8, 128], strides = [1, 1]} : vector<8x256xf32> to vector<8x128xf32>
    %cst_66 = arith.constant 5.000000e-01 : f32
    %79 = vector.broadcast %cst_66 : f32 to vector<8x128xf32>
    %80 = arith.mulf %79, %78 : vector<8x128xf32>
    %81 = math.exp %80 : vector<8x128xf32>
    %82 = arith.mulf %81, %66 : vector<8x128xf32>
    %83 = arith.addf %77, %82 : vector<8x128xf32>
    %c0_67 = arith.constant 0 : index
    %c0_68 = arith.constant 0 : index
    %84 = vector.load %arg30[%c0_67, %c0_68] : memref<8x128xf32, #tpu.memory_space<vmem>>, vector<8x128xf32>
    tpu.vector_store %arg30[%c0_67, %c0_68], %77 {strides = array<i32>} : memref<8x128xf32, #tpu.memory_space<vmem>>, vector<8x128xf32>,
    %c0_69 = arith.constant 0 : index
    %c0_70 = arith.constant 0 : index
    %85 = vector.load %arg31[%c0_69, %c0_70] : memref<8x128xf32, #tpu.memory_space<vmem>>, vector<8x128xf32>
    tpu.vector_store %arg31[%c0_69, %c0_70], %78 {strides = array<i32>} : memref<8x128xf32, #tpu.memory_space<vmem>>, vector<8x128xf32>,
    %c0_71 = arith.constant 0 : index
    %c0_72 = arith.constant 0 : index
    %86 = vector.load %arg32[%c0_71, %c0_72] : memref<8x128xf32, #tpu.memory_space<vmem>>, vector<8x128xf32>
    tpu.vector_store %arg32[%c0_71, %c0_72], %83 {strides = array<i32>} : memref<8x128xf32, #tpu.memory_space<vmem>>, vector<8x128xf32>,
    %c0_73 = arith.constant 0 : index
    %c0_74 = arith.constant 0 : index
    %87 = vector.load %arg20[%c0_73, %c0_74] : memref<128x32xf32, #tpu.memory_space<vmem>>, vector<128x32xf32>
    %cst_75 = arith.constant dense<0.000000e+00> : vector<8x32xf32>
    %88 = tpu.matmul %83, %87, %cst_75 {dimension_numbers = #tpu.dot_dimension_numbers<[1], [0], [0], [1], [0, 0, 1, 1], [], []>} : vector<8x128xf32>, vector<128x32xf32>, vector<8x32xf32> -> vector<8x32xf32>
    %c0_76 = arith.constant 0 : index
    %c0_77 = arith.constant 0 : index
    %89 = vector.load %arg21[%c0_76, %c0_77] : memref<1x32xf32, #tpu.memory_space<vmem>>, vector<1x32xf32>
    %90 = vector.broadcast %89 : vector<1x32xf32> to vector<8x32xf32>
    %91 = arith.addf %88, %90 : vector<8x32xf32>
    %cst_78 = arith.constant 0.000000e+00 : f32
    %92 = vector.broadcast %cst_78 : f32 to vector<8x32xf32>
    %93 = arith.maximumf %91, %92 : vector<8x32xf32>
    %c0_79 = arith.constant 0 : index
    %c0_80 = arith.constant 0 : index
    %94 = vector.load %arg22[%c0_79, %c0_80] : memref<32x128xf32, #tpu.memory_space<vmem>>, vector<32x128xf32>
    %cst_81 = arith.constant dense<0.000000e+00> : vector<8x128xf32>
    %95 = tpu.matmul %93, %94, %cst_81 {dimension_numbers = #tpu.dot_dimension_numbers<[1], [0], [0], [1], [0, 0, 1, 1], [], []>} : vector<8x32xf32>, vector<32x128xf32>, vector<8x128xf32> -> vector<8x128xf32>
    %c0_82 = arith.constant 0 : index
    %c0_83 = arith.constant 0 : index
    %96 = vector.load %arg23[%c0_82, %c0_83] : memref<1x128xf32, #tpu.memory_space<vmem>>, vector<1x128xf32>
    %97 = vector.broadcast %96 : vector<1x128xf32> to vector<8x128xf32>
    %98 = arith.addf %95, %97 : vector<8x128xf32>
    %99 = math.absf %98 : vector<8x128xf32>
    %cst_84 = arith.constant 0.000000e+00 : f32
    %100 = vector.broadcast %cst_84 : f32 to vector<8x128xf32>
    %101 = arith.subf %100, %99 : vector<8x128xf32>
    %102 = math.exp %101 : vector<8x128xf32>
    %cst_85 = arith.constant 1.000000e+00 : f32
    %103 = vector.broadcast %cst_85 : f32 to vector<8x128xf32>
    %104 = arith.addf %103, %102 : vector<8x128xf32>
    %105 = tpu.reciprocal %104 {approx = true} : vector<8x128xf32> -> vector<8x128xf32>
    %cst_86 = arith.constant 0.000000e+00 : f32
    %106 = vector.broadcast %cst_86 : f32 to vector<8x128xf32>
    %107 = arith.cmpf oge, %98, %106 : vector<8x128xf32>
    %108 = arith.mulf %102, %105 : vector<8x128xf32>
    %109 = arith.select %107, %105, %108 : vector<8x128xi1>, vector<8x128xf32>
    %cst_87 = arith.constant 0.000000e+00 : f32
    %cst_88 = arith.constant 1.000000e+00 : f32
    %110 = vector.broadcast %cst_87 : f32 to vector<8x128xf32>
    %111 = arith.maximumf %110, %109 : vector<8x128xf32>
    %112 = vector.broadcast %cst_88 : f32 to vector<8x128xf32>
    %113 = arith.minimumf %112, %111 : vector<8x128xf32>
    %c0_89 = arith.constant 0 : index
    %c0_90 = arith.constant 0 : index
    %114 = vector.load %arg33[%c0_89, %c0_90] : memref<8x128xf32, #tpu.memory_space<vmem>>, vector<8x128xf32>
    tpu.vector_store %arg33[%c0_89, %c0_90], %113 {strides = array<i32>} : memref<8x128xf32, #tpu.memory_space<vmem>>, vector<8x128xf32>,
    return
  }
}

</mosaic_0001>

<bundles_post_ra>
// kernel: aligned_vae_forward.1
= control target key start
LH: loop header
LB: loop body
LE: loop exit
PB: predicated region body
PF: predicated region fallthrough
CT: control target
= control target key end

     0   :  { %s1567_s6 = smov 1   ;;  %s1568_s10 = smov 2   ;;  %s1948_s0 = inlined_call_operand.smem [shape: u32[34], index: -1, kind: input, shape index: {}] }
   0x1   :  { %s1629_s5 = sld [smem:[%s1948_s0]]   ;;  %s1569_s14 = smov 3  }
   0x2   :  { %s1634_s9 = sld [smem:[%s1948_s0 + %s1567_s6]]   ;;  %s1570_s18 = smov 4  }
   0x3   :  { %s1639_s13 = sld [smem:[%s1948_s0 + %s1568_s10]]   ;;  %s1571_s22 = smov 5  }
   0x4   :  { %s1644_s17 = sld [smem:[%s1948_s0 + %s1569_s14]]   ;;  %s1572_s26 = smov 6  }
   0x5   :  { %s1649_s21 = sld [smem:[%s1948_s0 + %s1570_s18]]   ;;  %s1573_s30 = smov 7  }
   0x6   :  { %s1654_s25 = sld [smem:[%s1948_s0 + %s1571_s22]]   ;;  %s1574_s4 = smov 8  }
   0x7   :  { %s1659_s29 = sld [smem:[%s1948_s0 + %s1572_s26]]   ;;  %s1575_s10 = smov 9  }
   0x8   :  { %s1664_s3 = sld [smem:[%s1948_s0 + %s1573_s30]]   ;;  %s1576_s15 = smov 10  }
   0x9   :  { %s1669_s8 = sld [smem:[%s1948_s0 + %s1574_s4]]   ;;  %s1577_s20 = smov 11  }
   0xa   :  { %s1674_s14 = sld [smem:[%s1948_s0 + %s1575_s10]]   ;;  %s1578_s26 = smov 12  }
   0xb   :  { %1961 = sst [smem:[#allocation47_spill]] %s1649_s21  ;;  %s1579_s1 = smov 13  }
   0xc   :  { %1962 = sst [smem:[#allocation48_spill]] %s1654_s25  ;;  %s1580_s7 = smov 14  }
   0xd   :  { %s1679_s19 = sld [smem:[%s1948_s0 + %s1576_s15]]   ;;  %s1581_s15 = smov 15  }
   0xe   :  { %s1684_s24 = sld [smem:[%s1948_s0 + %s1577_s20]]   ;;  %s1582_s22 = smov 16  }
   0xf   :  { %1963 = sst [smem:[#allocation49_spill]] %s1669_s8  ;;  %s1583_s28 = smov 17  }
  0x10   :  { %s1689_s30 = sld [smem:[%s1948_s0 + %s1578_s26]]  }
  0x11   :  { %s1694_s6 = sld [smem:[%s1948_s0 + %s1579_s1]]  }
  0x12   :  { %s1699_s12 = sld [smem:[%s1948_s0 + %s1580_s7]]   ;;  %s1584_s7 = smov 18  }
  0x13   :  { %s1704_s20 = sld [smem:[%s1948_s0 + %s1581_s15]]   ;;  %s1585_s15 = smov 19  }
  0x14   :  { %1964 = sst [smem:[#allocation50_spill]] %s1684_s24 }
  0x15   :  { %s1709_s27 = sld [smem:[%s1948_s0 + %s1582_s22]]   ;;  %s1586_s22 = smov 20  }
  0x16   :  { %s1714_s4 = sld [smem:[%s1948_s0 + %s1583_s28]]   ;;  %s1587_s28 = smov 21  }
  0x17   :  { %1965 = sst [smem:[#allocation51_spill]] %s1694_s6 }
  0x18   :  { %s1719_s25 = sld [smem:[%s1948_s0 + %s1584_s7]]   ;;  %s1588_s7 = smov 22  }
  0x19   :  { %1966 = sst [smem:[#allocation52_spill]] %s1704_s20 }
  0x1a   :  { %s1724_s20 = sld [smem:[%s1948_s0 + %s1585_s15]]   ;;  %s1589_s15 = smov 23  }
  0x1b   :  { %1967 = sst [smem:[#allocation53_spill]] %s1709_s27 }
  0x1c   :  { %s1729_s27 = sld [smem:[%s1948_s0 + %s1586_s22]]   ;;  %s1590_s22 = smov 24  }
  0x1d   :  { %s1734_s21 = sld [smem:[%s1948_s0 + %s1587_s28]]   ;;  %s1591_s28 = smov 25  }
  0x1e   :  { %1968 = sst [smem:[#allocation54_spill]] %s1719_s25 }
  0x1f   :  { %s1739_s25 = sld [smem:[%s1948_s0 + %s1588_s7]]   ;;  %s1592_s7 = smov 26  }
  0x20   :  { %s1744_s6 = sld [smem:[%s1948_s0 + %s1589_s15]]   ;;  %s1593_s15 = smov 27  }
  0x21   :  { %s1754_s8 = sld [smem:[%s1948_s0 + %s1591_s28]]   ;;  %s1595_s28 = smov 29  }
  0x22   :  { %1969 = sst [smem:[#allocation55_spill]] %s1729_s27 }
  0x23   :  { %s1749_s27 = sld [smem:[%s1948_s0 + %s1590_s22]]   ;;  %s1594_s22 = smov 28  }
  0x24   :  { %s1764_s24 = sld [smem:[%s1948_s0 + %s1593_s15]]   ;;  %s1597_s15 = smov 31  }
  0x25   :  { %1970 = sst [smem:[#allocation56_spill]] %s1739_s25 }
  0x26   :  { %s1759_s25 = sld [smem:[%s1948_s0 + %s1592_s7]]   ;;  %s1596_s7 = smov 30  }
  0x27   :  { %1972 = sst [smem:[#allocation58_spill]] %s1754_s8 }
  0x28   :  { %s1774_s8 = sld [smem:[%s1948_s0 + %s1595_s28]]   ;;  %s1599_s28 = smov 33  }
  0x29   :  { %1971 = sst [smem:[#allocation57_spill]] %s1749_s27 }
  0x2a   :  { %1974 = sst [smem:[#allocation60_spill]] %s1764_s24 }
  0x2b   :  { %s1769_s27 = sld [smem:[%s1948_s0 + %s1594_s22]]   ;;  %s1598_s22 = smov 32  }
  0x2c   :  { %1973 = sst [smem:[#allocation59_spill]] %s1759_s25 }
  0x2d   :  { %s1779_s25 = sld [smem:[%s1948_s0 + %s1596_s7]]  }
  0x2e   :  { %1976 = sst [smem:[#allocation62_spill]] %s1774_s8 }
  0x2f   :  { %s1784_s24 = sld [smem:[%s1948_s0 + %s1597_s15]]  }
  0x30   :  { %s1794_s8 = sld [smem:[%s1948_s0 + %s1599_s28]]  }
  0x31   :  { %1975 = sst [smem:[#allocation61_spill]] %s1769_s27 }
  0x32   :  { %s1789_s27 = sld [smem:[%s1948_s0 + %s1598_s22]]  }
  0x33   :  { %73 = vsyncpa [#allocation3], 0 }
  0x34   :  { %74 = vsyncpa [#allocation6], 0 }
  0x35   :  { %75 = vsyncpa [#allocation9], 0 }
  0x36   :  { %76 = vsyncpa [#allocation12], 0 }
  0x37   :  { %77 = vsyncpa [#allocation15], 0 }
  0x38   :  { %78 = vsyncpa [#allocation18], 0 }
  0x39   :  { %79 = vsyncpa [#allocation4], 0 }
  0x3a   :  { %80 = vsyncpa [#allocation22], 0 }
  0x3b   :  { %81 = vsyncpa [#allocation25], 0 }
  0x3c   :  { %82 = vsyncpa [#allocation28], 0 }
  0x3d   :  { %83 = vsyncpa [#allocation31], 0  ;;  %s103_s7 = sshll.u32 %s1639_s13, 4  ;;  %s104_s7 = int_to_ptr.hbm [resolvable:$true] %s103_s7 }
  0x3e   :  { %84 = vsyncpa [#allocation34], 0  ;;  %s1600_s0 = smov [#allocation5]   ;;  %s131_s11 = sshll.u32 %s1664_s3, 4  ;;  %s132_s11 = int_to_ptr.hbm [resolvable:$true] %s131_s11 }
  0x3f   :  { %s105_s10 = sshll.u32 %s1600_s0, 4  ;;  %s1039_s15 = sshra.s32 %s104_s7, 4  ;;  %s106_s10 = int_to_ptr.vmem [resolvable:$true] %s105_s10  ;;  %s1040_s15 = int_to_ptr.hbm [resolvable:$true] %s1039_s15 }
  0x40   :  { %s1041_s16 = scalar_lea.hbm %s1040_s15, 8  ;;  %s1043_s18 = scalar_lea.hbm %s1639_s13, 8 }
  0x41   :  { %p1042_p0 = scmp.ne.s32.totalorder %s1040_s15, %s1041_s16  ;;  %p1044_p1 = scmp.lt.s32.totalorder %s1040_s15, %s1639_s13 }
  0x42   :  { %p1045_p2 = scmp.lt.s32.totalorder %s1043_s18, %s1041_s16 }
  0x44   :  { %p1046_p3 = por %p1045_p2, %p1044_p1 }
  0x46   :  { %p1047_p4 = pnand %p1046_p3, %p1042_p0 }
  0x48   :  { %1050 = shalt.err (!%p1047_p4)
}
  0x49   :  { %108 = dma.hbm_to_vmem [thread:$0]  %s104_s7, 128, %s106_s10, [#allocation6]  }
  0x4a   :  { %s1601_s22 = smov [#allocation8]   ;;  %s159_s26 = sshll.u32 %s1689_s30, 4  ;;  %s160_s26 = int_to_ptr.hbm [resolvable:$true] %s159_s26 }
  0x4b   :  { %s133_s23 = sshll.u32 %s1601_s22, 4  ;;  %s1063_s28 = sshra.s32 %s132_s11, 4  ;;  %s134_s23 = int_to_ptr.vmem [resolvable:$true] %s133_s23  ;;  %s1064_s28 = int_to_ptr.hbm [resolvable:$true] %s1063_s28 }
  0x4c   :  { %s1065_s1 = scalar_lea.hbm %s1064_s28, 8  ;;  %s1067_s2 = scalar_lea.hbm %s1664_s3, 8 }
  0x4d   :  { %p1066_p5 = scmp.ne.s32.totalorder %s1064_s28, %s1065_s1  ;;  %p1068_p6 = scmp.lt.s32.totalorder %s1064_s28, %s1664_s3 }
  0x4e   :  { %p1069_p7 = scmp.lt.s32.totalorder %s1067_s2, %s1065_s1 }
  0x50   :  { %p1070_p8 = por %p1069_p7, %p1068_p6 }
  0x52   :  { %p1071_p9 = pnand %p1070_p8, %p1066_p5 }
  0x54   :  { %1074 = shalt.err (!%p1071_p9)
}
  0x55   :  { %136 = dma.hbm_to_vmem [thread:$0]  %s132_s11, 128, %s134_s23, [#allocation9]  }
  0x56   :  { %s187_s13 = sshll.u32 %s1714_s4, 4  ;;  %s1602_s7 = smov [#allocation11]   ;;  %s188_s13 = int_to_ptr.hbm [resolvable:$true] %s187_s13 }
  0x57   :  { %s161_s0 = sshll.u32 %s1602_s7, 4  ;;  %s1087_s10 = sshra.s32 %s160_s26, 4  ;;  %s162_s0 = int_to_ptr.vmem [resolvable:$true] %s161_s0  ;;  %s1088_s10 = int_to_ptr.hbm [resolvable:$true] %s1087_s10 }
  0x58   :  { %s1089_s15 = scalar_lea.hbm %s1088_s10, 1  ;;  %s1091_s16 = scalar_lea.hbm %s1689_s30, 1 }
  0x59   :  { %p1090_p10 = scmp.ne.s32.totalorder %s1088_s10, %s1089_s15  ;;  %p1092_p11 = scmp.lt.s32.totalorder %s1088_s10, %s1689_s30 }
  0x5a   :  { %p1093_p12 = scmp.lt.s32.totalorder %s1091_s16, %s1089_s15 }
  0x5c   :  { %p1094_p13 = por %p1093_p12, %p1092_p11 }
  0x5e   :  { %p1095_p0 = pnand %p1094_p13, %p1090_p10 }
  0x60   :  { %1098 = shalt.err (!%p1095_p0)
}
  0x61   :  { %164 = dma.hbm_to_vmem [thread:$0]  %s160_s26, 16, %s162_s0, [#allocation12]  }
  0x62   :  { %s1603_s3 = smov [#allocation14]   ;;  %s213_s18 = sshll.u32 %s1734_s21, 4  ;;  %s214_s18 = int_to_ptr.hbm [resolvable:$true] %s213_s18 }
  0x63   :  { %s189_s11 = sshll.u32 %s1603_s3, 4  ;;  %s1111_s22 = sshra.s32 %s188_s13, 4  ;;  %s190_s11 = int_to_ptr.vmem [resolvable:$true] %s189_s11  ;;  %s1112_s22 = int_to_ptr.hbm [resolvable:$true] %s1111_s22 }
  0x64   :  { %s1113_s23 = scalar_lea.hbm %s1112_s22, 1  ;;  %s1115_s28 = scalar_lea.hbm %s1714_s4, 1 }
  0x65   :  { %p1114_p1 = scmp.ne.s32.totalorder %s1112_s22, %s1113_s23  ;;  %p1116_p2 = scmp.lt.s32.totalorder %s1112_s22, %s1714_s4 }
  0x66   :  { %p1117_p3 = scmp.lt.s32.totalorder %s1115_s28, %s1113_s23 }
  0x68   :  { %p1118_p4 = por %p1117_p3, %p1116_p2 }
  0x6a   :  { %p1119_p5 = pnand %p1118_p4, %p1114_p1 }
  0x6c   :  { %1122 = shalt.err (!%p1119_p5)
}
  0x6d   :  { %192 = dma.hbm_to_vmem [thread:$0]  %s188_s13, 16, %s190_s11, [#allocation15]  }
  0x6e   :  { %s92_s30 = sshll.u32 %s1634_s9, 4  ;;  %s1604_s26 = smov [#allocation17]   ;;  %s93_s30 = int_to_ptr.hbm [resolvable:$true] %s92_s30 }
  0x6f   :  { %s215_s1 = sshll.u32 %s1604_s26, 4  ;;  %s1135_s2 = sshra.s32 %s214_s18, 4  ;;  %s216_s1 = int_to_ptr.vmem [resolvable:$true] %s215_s1  ;;  %s1136_s2 = int_to_ptr.hbm [resolvable:$true] %s1135_s2 }
  0x70   :  { %s1137_s7 = scalar_lea.hbm %s1136_s2, 1  ;;  %s1139_s0 = scalar_lea.hbm %s1734_s21, 1 }
  0x71   :  { %p1138_p6 = scmp.ne.s32.totalorder %s1136_s2, %s1137_s7  ;;  %p1140_p7 = scmp.lt.s32.totalorder %s1136_s2, %s1734_s21 }
  0x72   :  { %p1141_p8 = scmp.lt.s32.totalorder %s1139_s0, %s1137_s7 }
  0x74   :  { %p1142_p9 = por %p1141_p8, %p1140_p7 }
  0x76   :  { %p1143_p10 = pnand %p1142_p9, %p1138_p6 }
  0x78   :  { %1146 = shalt.err (!%p1143_p10)
}
  0x79   :  { %218 = dma.hbm_to_vmem [thread:$0]  %s214_s18, 16, %s216_s1, [#allocation18]  }
  0x7a   :  { %s1605_s4 = smov [#allocation2]   ;;  %s114_s10 = sshll.u32 %s1644_s17, 4  ;;  %s115_s10 = int_to_ptr.hbm [resolvable:$true] %s114_s10 }
  0x7b   :  { %s94_s13 = sshll.u32 %s1605_s4, 4  ;;  %s1159_s15 = sshra.s32 %s93_s30, 4  ;;  %s95_s13 = int_to_ptr.vmem [resolvable:$true] %s94_s13  ;;  %s1160_s15 = int_to_ptr.hbm [resolvable:$true] %s1159_s15 }
  0x7c   :  { %s1161_s16 = scalar_lea.hbm %s1160_s15, 8  ;;  %s1163_s3 = scalar_lea.hbm %s1634_s9, 8 }
  0x7d   :  { %p1162_p11 = scmp.ne.s32.totalorder %s1160_s15, %s1161_s16  ;;  %p1164_p12 = scmp.lt.s32.totalorder %s1160_s15, %s1634_s9 }
  0x7e   :  { %p1165_p13 = scmp.lt.s32.totalorder %s1163_s3, %s1161_s16 }
  0x80   :  { %p1166_p0 = por %p1165_p13, %p1164_p12 }
  0x82   :  { %p1167_p1 = pnand %p1166_p0, %p1162_p11 }
  0x84   :  { %1170 = shalt.err (!%p1167_p1)
}
  0x85   :  { %97 = dma.hbm_to_vmem [thread:$0]  %s93_s30, 128, %s95_s13, [#allocation3]  }
  0x86   :  { %s146_s21 = sshll.u32 %s1679_s19, 4  ;;  %s1606_s11 = smov [#allocation7]   ;;  %s147_s21 = int_to_ptr.hbm [resolvable:$true] %s146_s21 }
  0x87   :  { %s116_s18 = sshll.u32 %s1606_s11, 4  ;;  %s1183_s22 = sshra.s32 %s115_s10, 4  ;;  %s117_s18 = int_to_ptr.vmem [resolvable:$true] %s116_s18  ;;  %s1184_s22 = int_to_ptr.hbm [resolvable:$true] %s1183_s22 }
  0x88   :  { %s1185_s23 = scalar_lea.hbm %s1184_s22, 8  ;;  %s1187_s28 = scalar_lea.hbm %s1644_s17, 8 }
  0x89   :  { %p1186_p2 = scmp.ne.s32.totalorder %s1184_s22, %s1185_s23  ;;  %p1188_p3 = scmp.lt.s32.totalorder %s1184_s22, %s1644_s17 }
  0x8a   :  { %p1189_p4 = scmp.lt.s32.totalorder %s1187_s28, %s1185_s23 }
  0x8c   :  { %p1190_p5 = por %p1189_p4, %p1188_p3 }
  0x8e   :  { %p1191_p6 = pnand %p1190_p5, %p1186_p2 }
  0x90   :  { %1194 = shalt.err (!%p1191_p6)
}
  0x91   :  { %119 = dma.hbm_to_vmem [thread:$0]  %s115_s10, 128, %s117_s18, [#allocation6]  }
  0x92   :  { %s1607_s9 = smov [#allocation10]   ;;  %s172_s26 = sshll.u32 %s1699_s12, 4  ;;  %s173_s26 = int_to_ptr.hbm [resolvable:$true] %s172_s26 }
  0x93   :  { %s148_s30 = sshll.u32 %s1607_s9, 4  ;;  %s1207_s1 = sshra.s32 %s147_s21, 4  ;;  %s149_s30 = int_to_ptr.vmem [resolvable:$true] %s148_s30  ;;  %s1208_s1 = int_to_ptr.hbm [resolvable:$true] %s1207_s1 }
  0x94   :  { %s1209_s2 = scalar_lea.hbm %s1208_s1, 2  ;;  %s1211_s7 = scalar_lea.hbm %s1679_s19, 2 }
  0x95   :  { %p1210_p7 = scmp.ne.s32.totalorder %s1208_s1, %s1209_s2  ;;  %p1212_p8 = scmp.lt.s32.totalorder %s1208_s1, %s1679_s19 }
  0x96   :  { %p1213_p9 = scmp.lt.s32.totalorder %s1211_s7, %s1209_s2 }
  0x98   :  { %p1214_p10 = por %p1213_p9, %p1212_p8 }
  0x9a   :  { %p1215_p11 = pnand %p1214_p10, %p1210_p7 }
  0x9c   :  { %1218 = shalt.err (!%p1215_p11)
}
  0x9d   :  { %151 = dma.hbm_to_vmem [thread:$0]  %s147_s21, 32, %s149_s30, [#allocation9]  }
  0x9e   :  { %s200_s17 = sshll.u32 %s1724_s20, 4  ;;  %s1608_s0 = smov [#allocation13]   ;;  %s201_s17 = int_to_ptr.hbm [resolvable:$true] %s200_s17 }
  0x9f   :  { %s174_s4 = sshll.u32 %s1608_s0, 4  ;;  %s1231_s13 = sshra.s32 %s173_s26, 4  ;;  %s175_s4 = int_to_ptr.vmem [resolvable:$true] %s174_s4  ;;  %s1232_s13 = int_to_ptr.hbm [resolvable:$true] %s1231_s13 }
  0xa0   :  { %s1233_s10 = scalar_lea.hbm %s1232_s13, 3  ;;  %s1235_s15 = scalar_lea.hbm %s1699_s12, 3 }
  0xa1   :  { %p1234_p12 = scmp.ne.s32.totalorder %s1232_s13, %s1233_s10  ;;  %p1236_p13 = scmp.lt.s32.totalorder %s1232_s13, %s1699_s12 }
  0xa2   :  { %p1237_p0 = scmp.lt.s32.totalorder %s1235_s15, %s1233_s10 }
  0xa4   :  { %p1238_p1 = por %p1237_p0, %p1236_p13 }
  0xa6   :  { %p1239_p2 = pnand %p1238_p1, %p1234_p12 }
  0xa8   :  { %1242 = shalt.err (!%p1239_p2)
}
  0xa9   :  { %177 = dma.hbm_to_vmem [thread:$0]  %s173_s26, 48, %s175_s4, [#allocation12]  }
  0xaa   :  { %s1609_s19 = smov [#allocation16]   ;;  %s226_s3 = sshll.u32 %s1744_s6, 4  ;;  %s227_s3 = int_to_ptr.hbm [resolvable:$true] %s226_s3 }
  0xab   :  { %s202_s16 = sshll.u32 %s1609_s19, 4  ;;  %s1255_s21 = sshra.s32 %s201_s17, 4  ;;  %s203_s16 = int_to_ptr.vmem [resolvable:$true] %s202_s16  ;;  %s1256_s21 = int_to_ptr.hbm [resolvable:$true] %s1255_s21 }
  0xac   :  { %s1257_s11 = scalar_lea.hbm %s1256_s21, 2  ;;  %s1259_s18 = scalar_lea.hbm %s1724_s20, 2 }
  0xad   :  { %p1258_p3 = scmp.ne.s32.totalorder %s1256_s21, %s1257_s11  ;;  %p1260_p4 = scmp.lt.s32.totalorder %s1256_s21, %s1724_s20 }
  0xae   :  { %p1261_p5 = scmp.lt.s32.totalorder %s1259_s18, %s1257_s11 }
  0xb0   :  { %p1262_p6 = por %p1261_p5, %p1260_p4 }
  0xb2   :  { %p1263_p7 = pnand %p1262_p6, %p1258_p3 }
  0xb4   :  { %1266 = shalt.err (!%p1263_p7)
}
  0xb5   :  { %205 = dma.hbm_to_vmem [thread:$0]  %s201_s17, 32, %s203_s16, [#allocation15]  }
  0xb6   :  { %s1610_s12 = smov [#allocation19]   ;;  %s1279_s23 = sshra.s32 %s227_s3, 4  ;;  %s1280_s23 = int_to_ptr.hbm [resolvable:$true] %s1279_s23 }
  0xb7   :  { %s228_s22 = sshll.u32 %s1610_s12, 4  ;;  %s1281_s28 = scalar_lea.hbm %s1280_s23, 1  ;;  %s229_s22 = int_to_ptr.vmem [resolvable:$true] %s228_s22 }
  0xb8   :  { %p1282_p8 = scmp.ne.s32.totalorder %s1280_s23, %s1281_s28  ;;  %s1283_s9 = scalar_lea.hbm %s1744_s6, 1 }
  0xb9   :  { %p1284_p9 = scmp.lt.s32.totalorder %s1280_s23, %s1744_s6  ;;  %p1285_p10 = scmp.lt.s32.totalorder %s1283_s9, %s1281_s28 }
  0xbb   :  { %p1286_p11 = por %p1285_p10, %p1284_p9 }
  0xbd   :  { %p1287_p12 = pnand %p1286_p11, %p1282_p8 }
  0xbf   :  { %1290 = shalt.err (!%p1287_p12)
}
  0xc0   :  { %231 = dma.hbm_to_vmem [thread:$0]  %s227_s3, 16, %s229_s22, [#allocation18]  }
  0xc1   :  { %1543 = dma.done.wait [#allocation3], 128  }
  0xc2   :  { %1544 = vsyncadd [#allocation3], 4294967168 }
  0xc3   :  { %1545 = dma.done.wait [#allocation6], 256  }
  0xc4   :  { %1546 = vsyncadd [#allocation6], 4294967040 }
  0xc5   :  { %1547 = dma.done.wait [#allocation9], 160  }
  0xc6   :  { %1548 = vsyncadd [#allocation9], 4294967136 }
  0xc7   :  { %1549 = dma.done.wait [#allocation12], 64  }
  0xc8   :  { %1550 = vsyncadd [#allocation12], 4294967232 }
  0xc9   :  { %1551 = dma.done.wait [#allocation15], 48  }
  0xca   :  { %1552 = vsyncadd [#allocation15], 4294967248 }
  0xcb   :  { %1553 = dma.done.wait [#allocation18], 32  }
  0xcc   :  { %1554 = vsyncadd [#allocation18], 4294967264  ;;  %v281_v0 = vld [vmem:[%s1659_s29 + $0x18] sm:$0xff]  ;;  %v280_v1 = vld [vmem:[%s1659_s29 + $0x10] sm:$0xff]  ;;  %vm294_vm0 = vcmask 64512   ;;  %vm318_vm1 = vcmask 261120  }
  0xcd   :  { %334 = vmatpush.msra.mxu1 %v281_v0  ;;  %v282_v2 = vld [vmem:[#allocation8] sm:$0xff]  ;;  %v277_v3 = vld [vmem:[#allocation2] sm:$0xff]  ;;  %v279_v4 = vld [vmem:[%s1659_s29 + $0x8] sm:$0xff]  ;;  %s1977_s6 = sld [smem:[#allocation50_spill]]  ;;  %s1611_s4 = smov [#allocation21]  }
  0xce   :  { %313 = vmatpush.msra.mxu0 %v282_v2  ;;  %v278_v5 = vld [vmem:[%s1659_s29] sm:$0xff]  ;;  %v290_v7 = vld [vmem:[%s1674_s14 + $0x30] sm:$0xff]  ;;  %v291_v8 = vld [vmem:[%s1674_s14 + $0x38] sm:$0xff]  ;;  %s1979_s29 = sld [smem:[#allocation51_spill]]  ;;  %s774_s13 = sshll.u32 %s1611_s4, 4  ;;  %s775_s13 = int_to_ptr.vmem [resolvable:$true] %s774_s13 }
  0xcf   :  { %335 = vmatpush.msra.mxu1 %v280_v1  ;;  %953 = vmatmul.msk.f32.vlgmr.msra.gmra.mxu0 %vm294_vm0, %v277_v3  ;;  %v276_v6 = vld [vmem:[%s1629_s5] sm:$0xff]  ;;  %v289_v10 = vld [vmem:[%s1674_s14 + $0x28] sm:$0xff]  ;;  %v286_v11 = vld [vmem:[%s1674_s14 + $0x10] sm:$0xff]  ;;  %s1978_s5 = sld [smem:[#allocation49_spill]] }
  0xd0   :  { %387 = vmatpush.msra.mxu3 %v291_v8  ;;  %v288_v9 = vld [vmem:[%s1674_s14 + $0x20] sm:$0xff]  ;;  %v287_v12 = vld [vmem:[%s1674_s14 + $0x18] sm:$0xff]  ;;  %v285_v14 = vld [vmem:[%s1674_s14 + $0x8] sm:$0xff]  ;;  %s1981_s20 = sld [smem:[#allocation52_spill]] }
  0xd1   :  { %336 = vmatpush.msra.mxu1 %v279_v4  ;;  %v284_v13 = vld [vmem:[%s1674_s14] sm:$0xff]  ;;  %s1980_s14 = sld [smem:[#allocation47_spill]]  ;;  %v549_v0 = vld [vmem:[#allocation5] sm:$0xff]  ;;  %v550_v8 = vld [vmem:[#allocation7] sm:$0xff] }
  0xd2   :  { %388 = vmatpush.msra.mxu3 %v289_v10  ;;  %v292_v40 = vld [vmem:[#allocation10] sm:$0x3]  ;;  %s1982_s30 = sld [smem:[#allocation53_spill]]  ;;  %v1021_v4 = vld [vmem:[#allocation11] ss:$0 sm:$0xff] }
  0xd3   :  { %337 = vmatpush.msra.mxu1 %v278_v5  ;;  %v418_v15 = vld [vmem:[%s1977_s6 + $0x78] sm:$0xff]  ;;  %v417_v16 = vld [vmem:[%s1977_s6 + $0x70] sm:$0xff]  ;;  %v416_v17 = vld [vmem:[%s1977_s6 + $0x68] sm:$0xff]  ;;  %v348_v41 = vperm.slane %v292_v40, 0  ;;  %v349_v44 = vperm.slane %v292_v40, 1  ;;  %s1983_s26 = sld [smem:[#allocation54_spill]] }
  0xd4   :  { %954 = vmatmul.msk.f32.vlgmr.msra.gmra.mxu1 %vm318_vm1, %v276_v6  ;;  %389 = vmatpush.msra.mxu3 %v287_v12  ;;  %v415_v18 = vld [vmem:[%s1977_s6 + $0x60] sm:$0xff]  ;;  %v414_v25 = vld [vmem:[%s1977_s6 + $0x58] sm:$0xff]  ;;  %v413_v26 = vld [vmem:[%s1977_s6 + $0x50] sm:$0xff]  ;;  %s1984_s1 = sld [smem:[#allocation55_spill]] }
  0xd5   :  { %367 = vmatpush.msrb.mxu1 %v290_v7  ;;  %423 = vmatpush.msrb.mxu0 %v418_v15  ;;  %v1020_v20 = vld [vmem:[%s1978_s5] ss:$0 sm:$0xff]  ;;  %v412_v27 = vld [vmem:[%s1977_s6 + $0x48] sm:$0xff]  ;;  %v410_v29 = vld [vmem:[%s1977_s6 + $0x38] sm:$0xff]  ;;  %s1985_s2 = sld [smem:[#allocation56_spill]] }
  0xd6   :  { %390 = vmatpush.msra.mxu3 %v285_v14  ;;  %v411_v28 = vld [vmem:[%s1977_s6 + $0x40] sm:$0xff]  ;;  %v409_v30 = vld [vmem:[%s1977_s6 + $0x30] sm:$0xff]  ;;  %v408_v31 = vld [vmem:[%s1977_s6 + $0x28] sm:$0xff]  ;;  %s1986_s7 = sld [smem:[#allocation48_spill]] }
  0xd7   :  { %368 = vmatpush.msrb.mxu1 %v288_v9  ;;  %424 = vmatpush.msrb.mxu0 %v417_v16  ;;  %v407_v32 = vld [vmem:[%s1977_s6 + $0x20] sm:$0xff]  ;;  %v406_v33 = vld [vmem:[%s1977_s6 + $0x18] sm:$0xff]  ;;  %v405_v34 = vld [vmem:[%s1977_s6 + $0x10] sm:$0xff]  ;;  %s1987_s17 = sld [smem:[#allocation58_spill]] }
  0xd8   :  { %v404_v35 = vld [vmem:[%s1977_s6 + $0x8] sm:$0xff]  ;;  %v403_v36 = vld [vmem:[%s1977_s6] sm:$0xff]  ;;  %v454_v38 = vld [vmem:[%s1979_s29 + $0x50] sm:$0xff] }
  0xd9   :  { %369 = vmatpush.msrb.mxu1 %v286_v11  ;;  %425 = vmatpush.msrb.mxu0 %v416_v17  ;;  %v453_v37 = vld [vmem:[%s1979_s29 + $0x48] sm:$0xff]  ;;  %v450_v39 = vld [vmem:[%s1979_s29 + $0x30] sm:$0xff]  ;;  %v293_v49 = vld [vmem:[%s1980_s14] sm:$0xff] }
  0xda   :  { %499 = vmatpush.msrb.mxu3 %v454_v38  ;;  %v451_v53 = vld [vmem:[%s1979_s29 + $0x38] sm:$0xff]  ;;  %v448_v56 = vld [vmem:[%s1979_s29 + $0x20] sm:$0xff]  ;;  %v553_v57 = vld [vmem:[%s1981_s20 + $0x10] sm:$0xff] }
  0xdb   :  { %370 = vmatpush.msrb.mxu1 %v284_v13  ;;  %426 = vmatpush.msrb.mxu0 %v415_v18  ;;  %v554_v54 = vld [vmem:[%s1981_s20 + $0x18] sm:$0xff]  ;;  %v444_v58 = vld [vmem:[%s1979_s29] sm:$0xff]  ;;  %v445_v59 = vld [vmem:[%s1979_s29 + $0x8] sm:$0xff] }
  0xdc   :  { %500 = vmatpush.msrb.mxu3 %v451_v53  ;;  %605 = vmatpush.msra.mxu2 %v554_v54  ;;  %v447_v55 = vld [vmem:[%s1979_s29 + $0x18] sm:$0xff]  ;;  %v552_v60 = vld [vmem:[%s1981_s20 + $0x8] sm:$0xff]  ;;  %v555_v61 = vld [vmem:[%s1982_s30] sm:$0xff] }
  0xdd   :  { %427 = vmatpush.msrb.mxu0 %v414_v25  ;;  %479 = vmatpush.msra.mxu1 %v453_v37  ;;  %v455_v62 = vld [vmem:[%s1979_s29 + $0x58] sm:$0xff]  ;;  %v551_v63 = vld [vmem:[%s1981_s20] sm:$0xff]  ;;  %v449_v2 = vld [vmem:[%s1979_s29 + $0x28] sm:$0xff]  ;;  %s776_s0 = sshll.u32 %s1987_s17, 4  ;;  %s1319_s19 = scalar_lea.hbm %s1987_s17, 8  ;;  %s777_s0 = int_to_ptr.hbm [resolvable:$true] %s776_s0 }
  0xde   :  { %501 = vmatpush.msrb.mxu3 %v448_v56  ;;  %606 = vmatpush.msra.mxu2 %v553_v57  ;;  %v452_v1 = vld [vmem:[%s1979_s29 + $0x40] sm:$0xff]  ;;  %v446_v3 = vld [vmem:[%s1979_s29 + $0x10] sm:$0xff]  ;;  %v564_v9 = vld [vmem:[%s1983_s26 + $0x38] sm:$0xff]  ;;  %s1315_s10 = sshra.s32 %s777_s0, 4  ;;  %s1316_s10 = int_to_ptr.hbm [resolvable:$true] %s1315_s10 }
  0xdf   :  { %428 = vmatpush.msrb.mxu0 %v413_v26  ;;  %480 = vmatpush.msra.mxu1 %v450_v39  ;;  %v563_v10 = vld [vmem:[%s1983_s26 + $0x30] sm:$0xff]  ;;  %v562_v11 = vld [vmem:[%s1983_s26 + $0x28] sm:$0xff]  ;;  %v561_v12 = vld [vmem:[%s1983_s26 + $0x20] sm:$0xff]  ;;  %s1317_s15 = scalar_lea.hbm %s1316_s10, 8  ;;  %p1320_p0 = scmp.lt.s32.totalorder %s1316_s10, %s1987_s17 }
  0xe0   :  { %502 = vmatpush.msrb.mxu3 %v445_v59  ;;  %607 = vmatpush.msra.mxu2 %v552_v60  ;;  %v560_v13 = vld [vmem:[%s1983_s26 + $0x18] sm:$0xff]  ;;  %v559_v14 = vld [vmem:[%s1983_s26 + $0x10] sm:$0xff]  ;;  %v558_v15 = vld [vmem:[%s1983_s26 + $0x8] sm:$0xff]  ;;  %p1318_p13 = scmp.ne.s32.totalorder %s1316_s10, %s1317_s15  ;;  %p1321_p1 = scmp.lt.s32.totalorder %s1319_s19, %s1317_s15 }
  0xe1   :  { %429 = vmatpush.msrb.mxu0 %v412_v27  ;;  %481 = vmatpush.msra.mxu1 %v447_v55  ;;  %v557_v16 = vld [vmem:[%s1983_s26] sm:$0xff]  ;;  %v685_v27 = vld [vmem:[%s1984_s1 + $0x58] sm:$0xff]  ;;  %v680_v59 = vld [vmem:[%s1984_s1 + $0x30] sm:$0xff] }
  0xe2   :  { %608 = vmatpush.msra.mxu2 %v551_v63  ;;  %v456_v17 = vld [vmem:[#allocation13] sm:$0x7]  ;;  %v679_v60 = vld [vmem:[%s1984_s1 + $0x28] sm:$0xff]  ;;  %v676_v63 = vld [vmem:[%s1984_s1 + $0x10] sm:$0xff]  ;;  %p1322_p2 = por %p1321_p1, %p1320_p0 }
  0xe3   :  { %430 = vmatpush.msrb.mxu0 %v411_v28  ;;  %482 = vmatpush.msra.mxu1 %v444_v58  ;;  %v458_v18 = vperm.slane %v456_v17, 0  ;;  %v459_v26 = vperm.slane %v456_v17, 1  ;;  %v682_v57 = vld [vmem:[%s1984_s1 + $0x40] sm:$0xff]  ;;  %v681_v58 = vld [vmem:[%s1984_s1 + $0x38] sm:$0xff] }
  0xe4   :  { %962 = vmatmul.msk.f32.vlgmr.msra.gmra.mxu2 %vm318_vm1, %v549_v0  ;;  %v675_v0 = vld [vmem:[%s1984_s1 + $0x8] sm:$0xff]  ;;  %p1323_p3 = pnand %p1322_p2, %p1318_p13 }
  0xe5   :  { %431 = vmatpush.msrb.mxu0 %v410_v29 }
  0xe7   :  { %432 = vmatpush.msrb.mxu0 %v409_v30 }
  0xe9   :  { %433 = vmatpush.msrb.mxu0 %v408_v31  ;;  %v684_v31 = vld [vmem:[%s1984_s1 + $0x50] sm:$0xff] }
  0xeb   :  { %434 = vmatpush.msrb.mxu0 %v407_v32 }
  0xed   :  { %435 = vmatpush.msrb.mxu0 %v406_v33 }
  0xef   :  { %436 = vmatpush.msrb.mxu0 %v405_v34  ;;  %v1022_v34 = vld [vmem:[#allocation14] ss:$0 sm:$0xff] }
  0xf1   :  { %437 = vmatpush.msrb.mxu0 %v404_v35 }
  0xf3   :  { %438 = vmatpush.msrb.mxu0 %v403_v36  ;;  %v683_v36 = vld [vmem:[%s1984_s1 + $0x48] sm:$0xff] }
 0x14c   :  { %v315_v19 = vpop.f32.mrf.mxu0 }
 0x151   :  { %v339_v21 = vpop.f32.mrf.mxu1 }
 0x152   :  { %v340_v22 = vadd.f32 %v339_v21, %v315_v19  ;;  %v689_v19 = vld [vmem:[%s1984_s1 + $0x78] sm:$0xff] }
 0x153   :  { %694 = vmatpush.msrb.mxu2 %v689_v19  ;;  %v1023_v19 = vld [vmem:[#allocation17] ss:$0 sm:$0xff] }
 0x154   :  { %v345_v23 = vadd.f32 %v1020_v20, %v340_v22  ;;  %v688_v20 = vld [vmem:[%s1984_s1 + $0x70] sm:$0xff]  ;;  %v687_v22 = vld [vmem:[%s1984_s1 + $0x68] sm:$0xff] }
 0x155   :  { %695 = vmatpush.msrb.mxu2 %v688_v20 }
 0x156   :  { %v346_v24 = vmax.f32 %v345_v23, 0.0 }
 0x157   :  { %696 = vmatpush.msrb.mxu2 %v687_v22 }
 0x158   :  { %955 = vmatmul.msk.f32.vlgmr.msrb.gmra.mxu1 %vm318_vm1, %v346_v24  ;;  %956 = vmatmul.msk.f32.vlgmr.msra.gmra.mxu3 %vm318_vm1, %v346_v24  ;;  %v686_v24 = vld [vmem:[%s1984_s1 + $0x60] sm:$0xff] }
 0x159   :  { %585 = vmatpush.msrb.mxu1 %v555_v61  ;;  %519 = vmatpush.msra.mxu3 %v455_v62  ;;  %v678_v61 = vld [vmem:[%s1984_s1 + $0x20] sm:$0xff]  ;;  %v677_v62 = vld [vmem:[%s1984_s1 + $0x18] sm:$0xff] }
 0x15a   :  { %697 = vmatpush.msrb.mxu2 %v686_v24 }
 0x15b   :  { %520 = vmatpush.msra.mxu3 %v452_v1  ;;  %v674_v1 = vld [vmem:[%s1984_s1] sm:$0xff] }
 0x15c   :  { %698 = vmatpush.msrb.mxu2 %v685_v27 }
 0x15d   :  { %521 = vmatpush.msra.mxu3 %v449_v2  ;;  %v718_v2 = vld [vmem:[%s1985_s2 + $0x18] sm:$0xff] }
 0x15e   :  { %699 = vmatpush.msrb.mxu2 %v684_v31 }
 0x15f   :  { %522 = vmatpush.msra.mxu3 %v446_v3  ;;  %v717_v3 = vld [vmem:[%s1985_s2 + $0x10] sm:$0xff] }
 0x160   :  { %700 = vmatpush.msrb.mxu2 %v683_v36 }
 0x162   :  { %701 = vmatpush.msrb.mxu2 %v682_v57 }
 0x164   :  { %702 = vmatpush.msrb.mxu2 %v681_v58 }
 0x166   :  { %703 = vmatpush.msrb.mxu2 %v680_v59 }
 0x167   :  { %v610_v30 = vpop.f32.mrf.mxu2 }
 0x168   :  { %704 = vmatpush.msrb.mxu2 %v679_v60 }
 0x16a   :  { %705 = vmatpush.msrb.mxu2 %v678_v61 }
 0x16c   :  { %706 = vmatpush.msrb.mxu2 %v677_v62 }
 0x16e   :  { %707 = vmatpush.msrb.mxu2 %v676_v63 }
 0x170   :  { %708 = vmatpush.msrb.mxu2 %v675_v0 }
 0x172   :  { %709 = vmatpush.msrb.mxu2 %v674_v1 }
 0x1d5   :  { %v372_v42 = vpop.f32.mrf.mxu1 }
 0x1d6   :  { %v373_v43 = vadd.f32 %v372_v42, %v348_v41  ;;  %v460_v41 = vperm.slane %v456_v17, 2  ;;  %v716_v17 = vld [vmem:[%s1985_s2 + $0x8] sm:$0xff] }
 0x1d8   :  { %400 = vst [vmem:[#allocation20] sm:$0xff] %v373_v43 }
 0x1db   :  { %v392_v45 = vpop.f32.mrf.mxu3 }
 0x1dc   :  { %v393_v46 = vadd.f32 %v392_v45, %v349_v44 }
 0x1de   :  { %v395_v47 = vmul.f32 0.5, %v393_v46  ;;  %401 = vst [vmem:[#allocation21] sm:$0xff] %v393_v46 }
 0x1e0   :  { %v396_v48 = vmul.f32 1.442695, %v395_v47 }
 0x1e2   :  { %1025 = vpow2.f32 %v396_v48 }
 0x1e8   :  { %v1026_v50 = vpop.eup %1025 }
 0x1e9   :  { %v398_v51 = vmul.f32 %v1026_v50, %v293_v49 }
 0x1eb   :  { %v399_v52 = vadd.f32 %v398_v51, %v373_v43 }
 0x1ed   :  { %439 = vmatmul.f32.vlgmr.msrb.gmra.mxu0 %v399_v52  ;;  %402 = vst [vmem:[#allocation23] sm:$0xff] %v399_v52 }
 0x26a   :  { %v440_v5 = vpop.f32.mrf.mxu0 }
 0x26b   :  { %v441_v6 = vadd.f32 %v1021_v4, %v440_v5  ;;  %v565_v4 = vld [vmem:[#allocation16] sm:$0x3] }
 0x26c   :  { %v620_v5 = vperm.slane %v565_v4, 1 }
 0x26d   :  { %v443_v7 = vmax.f32 %v441_v6, 0.0 }
 0x26f   :  { %957 = vmatmul.msk.f32.vlgmr.msra.gmra.mxu1 %vm318_vm1, %v443_v7  ;;  %958 = vmatmul.msk.f32.vlgmr.msrb.gmra.mxu3 %vm318_vm1, %v443_v7 }
 0x270   :  { %658 = vmatpush.msra.mxu1 %v564_v9  ;;  %638 = vmatpush.msrb.mxu3 %v563_v10  ;;  %v619_v9 = vperm.slane %v565_v4, 0 }
 0x272   :  { %659 = vmatpush.msra.mxu1 %v562_v11  ;;  %639 = vmatpush.msrb.mxu3 %v561_v12 }
 0x274   :  { %660 = vmatpush.msra.mxu1 %v560_v13  ;;  %640 = vmatpush.msrb.mxu3 %v559_v14  ;;  %v566_v13 = vld [vmem:[%s1986_s7] sm:$0xff] }
 0x276   :  { %661 = vmatpush.msra.mxu1 %v558_v15  ;;  %641 = vmatpush.msrb.mxu3 %v557_v16 }
 0x277   :  { %959 = vmatmul.msk.f32.vlgmr.msra.gmra.mxu3 %vm318_vm1, %v443_v7  ;;  %961 = vmatmul.msk.f32.vlgmr.msrb.gmra.mxu1 %vm294_vm0, %v550_v8 }
 0x278   :  { %738 = vmatpush.msra.mxu3 %v718_v2 }
 0x27a   :  { %739 = vmatpush.msra.mxu3 %v717_v3 }
 0x27c   :  { %740 = vmatpush.msra.mxu3 %v716_v17 }
 0x2ec   :  { %v484_v21 = vpop.f32.mrf.mxu1 }
 0x2ed   :  { %v485_v23 = vadd.f32 %v484_v21, %v458_v18  ;;  %v715_v18 = vld [vmem:[%s1985_s2] sm:$0xff] }
 0x2ee   :  { %741 = vmatpush.msra.mxu3 %v715_v18 }
 0x2ef   :  { %v528_v25 = vand.u32 2147483647, %v485_v23  ;;  %v527_v54 = vmax.f32 %v485_v23, 0.0 }
 0x2f1   :  { %v529_v28 = vsub.f32 0.0, %v528_v25 }
 0x2f2   :  { %v504_v29 = vpop.f32.mrf.mxu3 }
 0x2f3   :  { %v530_v32 = vmul.f32 1.442695, %v529_v28  ;;  %v505_v33 = vadd.f32 %v504_v29, %v459_v26 }
 0x2f4   :  { %v587_v35 = vpop.f32.mrf.mxu1 }
 0x2f5   :  { %1027 = vpow2.f32 %v530_v32  ;;  %v960_v37 = vclamps-f32 %v505_v33, 30.0  ;;  %v611_v38 = vadd.f32 %v610_v30, %v587_v35 }
 0x2f7   :  { %v545_v39 = vmul.f32 1.442695, %v960_v37  ;;  %v616_v40 = vadd.f32 %v1022_v34, %v611_v38 }
 0x2f9   :  { %1029 = vpow2.f32 %v545_v39  ;;  %v617_v42 = vmax.f32 %v616_v40, 0.0 }
 0x2fa   :  { %v524_v43 = vpop.f32.mrf.mxu3 }
 0x2fb   :  { %v1028_v44 = vpop.eup %1027  ;;  %v525_v45 = vadd.f32 %v524_v43, %v460_v41  ;;  %963 = vmatmul.msk.f32.vlgmr.msrb.gmra.mxu3 %vm318_vm1, %v617_v42  ;;  %964 = vmatmul.msk.f32.vlgmr.msra.gmra.mxu1 %vm318_vm1, %v617_v42 }
 0x2fc   :  { %v532_v46 = vadd.f32 1.0, %v1028_v44  ;;  %v535_v47 = vmul.f32 -0.5, %v1028_v44  ;;  %v538_v50 = vand.u32 2147483647, %v1028_v44 }
 0x2fd   :  { %548 = vst [vmem:[#allocation27] sm:$0xff] %v525_v45 }
 0x2fe   :  { %1031 = vlog2.f32 %v532_v46  ;;  %v536_v49 = vadd.f32 1.0, %v535_v47  ;;  %vm539_vm2 = vcmp.lt.f32.partialorder %v538_v50, 0.0004427343 }
 0x2ff   :  { %v1030_v48 = vpop.eup %1029 }
 0x300   :  { %547 = vst [vmem:[#allocation26] sm:$0xff] %v1030_v48  ;;  %v537_v53 = vmul.f32 %v1028_v44, %v536_v49 }
 0x304   :  { %v1032_v51 = vpop.eup %1031 }
 0x305   :  { %v534_v52 = vmul.f32 0.6931472, %v1032_v51 }
 0x307   :  { %v540_v55 = vsel %vm539_vm2, %v537_v53, %v534_v52 }
 0x308   :  { %v541_v56 = vadd.f32 %v540_v55, %v527_v54 }
 0x30a   :  { %542 = vst [vmem:[#allocation24] sm:$0xff] %v541_v56 }
 0x378   :  { %v663_v6 = vpop.f32.mrf.mxu1 }
 0x379   :  { %v664_v7 = vadd.f32 %v663_v6, %v620_v5 }
 0x37b   :  { %v666_v8 = vmul.f32 0.5, %v664_v7  ;;  %672 = vst [vmem:[#allocation30] sm:$0xff] %v664_v7 }
 0x37d   :  { %v667_v10 = vmul.f32 1.442695, %v666_v8 }
 0x37e   :  { %v643_v11 = vpop.f32.mrf.mxu3 }
 0x37f   :  { %1033 = vpow2.f32 %v667_v10  ;;  %v644_v12 = vadd.f32 %v643_v11, %v619_v9 }
 0x381   :  { %671 = vst [vmem:[#allocation29] sm:$0xff] %v644_v12 }
 0x385   :  { %v1034_v14 = vpop.eup %1033 }
 0x386   :  { %v669_v15 = vmul.f32 %v1034_v14, %v566_v13 }
 0x388   :  { %v670_v16 = vadd.f32 %v669_v15, %v644_v12 }
 0x38a   :  { %673 = vst [vmem:[#allocation32] sm:$0xff] %v670_v16  ;;  %710 = vmatmul.f32.vlgmr.msrb.gmra.mxu2 %v670_v16 }
 0x40d   :  { %v711_v20 = vpop.f32.mrf.mxu2 }
 0x40e   :  { %v712_v21 = vadd.f32 %v1023_v19, %v711_v20 }
 0x410   :  { %v714_v22 = vmax.f32 %v712_v21, 0.0 }
 0x412   :  { %965 = vmatmul.msk.f32.vlgmr.msra.gmra.mxu3 %vm318_vm1, %v714_v22 }
 0x413   :  { %1326 = shalt.err (!%p1323_p3)
}
 0x414   :  { %779 = dma.vmem_to_hbm [thread:$0]  %s775_s13, 128, %s777_s0, [#allocation22]  }
 0x415   :  { %s1988_s16 = sld [smem:[#allocation60_spill]]  ;;  %s1612_s3 = smov [#allocation24]  }
 0x416   :  { %s796_s21 = sshll.u32 %s1612_s3, 4  ;;  %s797_s21 = int_to_ptr.vmem [resolvable:$true] %s796_s21 }
 0x41b   :  { %s798_s11 = sshll.u32 %s1988_s16, 4  ;;  %s1343_s22 = scalar_lea.hbm %s1988_s16, 8  ;;  %s799_s11 = int_to_ptr.hbm [resolvable:$true] %s798_s11 }
 0x41c   :  { %s1339_s18 = sshra.s32 %s799_s11, 4  ;;  %s1340_s18 = int_to_ptr.hbm [resolvable:$true] %s1339_s18 }
 0x41d   :  { %s1341_s12 = scalar_lea.hbm %s1340_s18, 8  ;;  %p1344_p5 = scmp.lt.s32.totalorder %s1340_s18, %s1988_s16 }
 0x41e   :  { %p1342_p4 = scmp.ne.s32.totalorder %s1340_s18, %s1341_s12  ;;  %p1345_p6 = scmp.lt.s32.totalorder %s1343_s22, %s1341_s12 }
 0x420   :  { %p1346_p7 = por %p1345_p6, %p1344_p5 }
 0x422   :  { %p1347_p8 = pnand %p1346_p7, %p1342_p4 }
 0x424   :  { %1350 = shalt.err (!%p1347_p8)
}
 0x425   :  { %801 = dma.vmem_to_hbm [thread:$0]  %s797_s21, 128, %s799_s11, [#allocation25]  }
 0x426   :  { %s1989_s23 = sld [smem:[#allocation62_spill]]  ;;  %s1613_s9 = smov [#allocation27]  }
 0x427   :  { %s818_s6 = sshll.u32 %s1613_s9, 4  ;;  %s819_s6 = int_to_ptr.vmem [resolvable:$true] %s818_s6 }
 0x42c   :  { %s820_s28 = sshll.u32 %s1989_s23, 4  ;;  %s1367_s14 = scalar_lea.hbm %s1989_s23, 8  ;;  %s821_s28 = int_to_ptr.hbm [resolvable:$true] %s820_s28 }
 0x42d   :  { %s1363_s5 = sshra.s32 %s821_s28, 4  ;;  %s1364_s5 = int_to_ptr.hbm [resolvable:$true] %s1363_s5 }
 0x42e   :  { %s1365_s29 = scalar_lea.hbm %s1364_s5, 8  ;;  %p1368_p10 = scmp.lt.s32.totalorder %s1364_s5, %s1989_s23 }
 0x42f   :  { %p1366_p9 = scmp.ne.s32.totalorder %s1364_s5, %s1365_s29  ;;  %p1369_p11 = scmp.lt.s32.totalorder %s1367_s14, %s1365_s29 }
 0x431   :  { %p1370_p12 = por %p1369_p11, %p1368_p10 }
 0x433   :  { %p1371_p13 = pnand %p1370_p12, %p1366_p9 }
 0x435   :  { %1374 = shalt.err (!%p1371_p13)
}
 0x436   :  { %823 = dma.vmem_to_hbm [thread:$0]  %s819_s6, 128, %s821_s28, [#allocation28]  }
 0x437   :  { %s1614_s20 = smov [#allocation30]   ;;  %s842_s26 = sshll.u32 %s1784_s24, 4  ;;  %s843_s26 = int_to_ptr.hbm [resolvable:$true] %s842_s26 }
 0x438   :  { %s840_s30 = sshll.u32 %s1614_s20, 4  ;;  %s1387_s1 = sshra.s32 %s843_s26, 4  ;;  %s841_s30 = int_to_ptr.vmem [resolvable:$true] %s840_s30  ;;  %s1388_s1 = int_to_ptr.hbm [resolvable:$true] %s1387_s1 }
 0x439   :  { %s1389_s2 = scalar_lea.hbm %s1388_s1, 8  ;;  %s1391_s7 = scalar_lea.hbm %s1784_s24, 8 }
 0x43a   :  { %p1390_p0 = scmp.ne.s32.totalorder %s1388_s1, %s1389_s2  ;;  %p1392_p1 = scmp.lt.s32.totalorder %s1388_s1, %s1784_s24 }
 0x43b   :  { %p1393_p2 = scmp.lt.s32.totalorder %s1391_s7, %s1389_s2 }
 0x43d   :  { %p1394_p3 = por %p1393_p2, %p1392_p1 }
 0x43f   :  { %p1395_p4 = pnand %p1394_p3, %p1390_p0 }
 0x441   :  { %1398 = shalt.err (!%p1395_p4)
}
 0x442   :  { %845 = dma.vmem_to_hbm [thread:$0]  %s841_s30, 128, %s843_s26, [#allocation31]  }
 0x443   :  { %s1990_s17 = sld [smem:[#allocation57_spill]]  ;;  %s1615_s4 = smov [#allocation20]  }
 0x444   :  { %s763_s13 = sshll.u32 %s1615_s4, 4  ;;  %s764_s13 = int_to_ptr.vmem [resolvable:$true] %s763_s13 }
 0x449   :  { %s765_s0 = sshll.u32 %s1990_s17, 4  ;;  %s1415_s19 = scalar_lea.hbm %s1990_s17, 8  ;;  %s766_s0 = int_to_ptr.hbm [resolvable:$true] %s765_s0 }
 0x44a   :  { %s1411_s10 = sshra.s32 %s766_s0, 4  ;;  %s1412_s10 = int_to_ptr.hbm [resolvable:$true] %s1411_s10 }
 0x44b   :  { %s1413_s15 = scalar_lea.hbm %s1412_s10, 8  ;;  %p1416_p6 = scmp.lt.s32.totalorder %s1412_s10, %s1990_s17 }
 0x44c   :  { %p1414_p5 = scmp.ne.s32.totalorder %s1412_s10, %s1413_s15  ;;  %p1417_p7 = scmp.lt.s32.totalorder %s1415_s19, %s1413_s15 }
 0x44e   :  { %p1418_p8 = por %p1417_p7, %p1416_p6 }
 0x450   :  { %p1419_p9 = pnand %p1418_p8, %p1414_p5 }
 0x452   :  { %1422 = shalt.err (!%p1419_p9)
}
 0x453   :  { %768 = dma.vmem_to_hbm [thread:$0]  %s764_s13, 128, %s766_s0, [#allocation4]  }
 0x454   :  { %s1991_s24 = sld [smem:[#allocation59_spill]]  ;;  %s1616_s16 = smov [#allocation23]  }
 0x455   :  { %s785_s3 = sshll.u32 %s1616_s16, 4  ;;  %s786_s3 = int_to_ptr.vmem [resolvable:$true] %s785_s3 }
 0x45a   :  { %s787_s21 = sshll.u32 %s1991_s24, 4  ;;  %s1439_s12 = scalar_lea.hbm %s1991_s24, 8  ;;  %s788_s21 = int_to_ptr.hbm [resolvable:$true] %s787_s21 }
 0x45b   :  { %s1435_s11 = sshra.s32 %s788_s21, 4  ;;  %s1436_s11 = int_to_ptr.hbm [resolvable:$true] %s1435_s11 }
 0x45c   :  { %s1437_s18 = scalar_lea.hbm %s1436_s11, 8  ;;  %p1440_p11 = scmp.lt.s32.totalorder %s1436_s11, %s1991_s24 }
 0x45d   :  { %p1438_p10 = scmp.ne.s32.totalorder %s1436_s11, %s1437_s18  ;;  %p1441_p12 = scmp.lt.s32.totalorder %s1439_s12, %s1437_s18 }
 0x45f   :  { %p1442_p13 = por %p1441_p12, %p1440_p11 }
 0x461   :  { %p1443_p0 = pnand %p1442_p13, %p1438_p10 }
 0x463   :  { %1446 = shalt.err (!%p1443_p0)
}
 0x464   :  { %790 = dma.vmem_to_hbm [thread:$0]  %s786_s3, 128, %s788_s21, [#allocation22]  }
 0x465   :  { %s1992_s22 = sld [smem:[#allocation61_spill]]  ;;  %s1617_s28 = smov [#allocation26]  }
 0x466   :  { %s807_s9 = sshll.u32 %s1617_s28, 4  ;;  %s808_s9 = int_to_ptr.vmem [resolvable:$true] %s807_s9 }
 0x46b   :  { %s809_s23 = sshll.u32 %s1992_s22, 4  ;;  %s1463_s29 = scalar_lea.hbm %s1992_s22, 8  ;;  %s810_s23 = int_to_ptr.hbm [resolvable:$true] %s809_s23 }
 0x46c   :  { %s1459_s6 = sshra.s32 %s810_s23, 4  ;;  %s1460_s6 = int_to_ptr.hbm [resolvable:$true] %s1459_s6 }
 0x46d   :  { %s1461_s5 = scalar_lea.hbm %s1460_s6, 8  ;;  %p1464_p2 = scmp.lt.s32.totalorder %s1460_s6, %s1992_s22 }
 0x46e   :  { %p1462_p1 = scmp.ne.s32.totalorder %s1460_s6, %s1461_s5  ;;  %p1465_p3 = scmp.lt.s32.totalorder %s1463_s29, %s1461_s5 }
 0x470   :  { %p1466_p4 = por %p1465_p3, %p1464_p2 }
 0x472   :  { %p1467_p5 = pnand %p1466_p4, %p1462_p1 }
 0x474   :  { %1470 = shalt.err (!%p1467_p5)
}
 0x475   :  { %812 = dma.vmem_to_hbm [thread:$0]  %s808_s9, 128, %s810_s23, [#allocation25]  }
 0x476   :  { %s1618_s14 = smov [#allocation29]   ;;  %s831_s30 = sshll.u32 %s1779_s25, 4  ;;  %s832_s30 = int_to_ptr.hbm [resolvable:$true] %s831_s30 }
 0x477   :  { %s829_s20 = sshll.u32 %s1618_s14, 4  ;;  %s1483_s26 = sshra.s32 %s832_s30, 4  ;;  %s830_s20 = int_to_ptr.vmem [resolvable:$true] %s829_s20  ;;  %s1484_s26 = int_to_ptr.hbm [resolvable:$true] %s1483_s26 }
 0x478   :  { %s1485_s1 = scalar_lea.hbm %s1484_s26, 8  ;;  %s1487_s2 = scalar_lea.hbm %s1779_s25, 8 }
 0x479   :  { %p1486_p6 = scmp.ne.s32.totalorder %s1484_s26, %s1485_s1  ;;  %p1488_p7 = scmp.lt.s32.totalorder %s1484_s26, %s1779_s25 }
 0x47a   :  { %p1489_p8 = scmp.lt.s32.totalorder %s1487_s2, %s1485_s1 }
 0x47c   :  { %p1490_p9 = por %p1489_p8, %p1488_p7 }
 0x47e   :  { %p1491_p10 = pnand %p1490_p9, %p1486_p6 }
 0x480   :  { %1494 = shalt.err (!%p1491_p10)
}
 0x481   :  { %834 = dma.vmem_to_hbm [thread:$0]  %s830_s20, 128, %s832_s30, [#allocation28]  }
 0x482   :  { %s853_s7 = sshll.u32 %s1789_s27, 4  ;;  %s1619_s17 = smov [#allocation32]   ;;  %s854_s7 = int_to_ptr.hbm [resolvable:$true] %s853_s7 }
 0x483   :  { %s851_s0 = sshll.u32 %s1619_s17, 4  ;;  %s1507_s4 = sshra.s32 %s854_s7, 4  ;;  %s852_s0 = int_to_ptr.vmem [resolvable:$true] %s851_s0  ;;  %s1508_s4 = int_to_ptr.hbm [resolvable:$true] %s1507_s4 }
 0x484   :  { %s1509_s13 = scalar_lea.hbm %s1508_s4, 8  ;;  %s1511_s10 = scalar_lea.hbm %s1789_s27, 8 }
 0x485   :  { %p1510_p11 = scmp.ne.s32.totalorder %s1508_s4, %s1509_s13  ;;  %p1512_p12 = scmp.lt.s32.totalorder %s1508_s4, %s1789_s27 }
 0x486   :  { %p1513_p13 = scmp.lt.s32.totalorder %s1511_s10, %s1509_s13 }
 0x488   :  { %p1514_p0 = por %p1513_p13, %p1512_p12 }
 0x48a   :  { %p1515_p1 = pnand %p1514_p0, %p1510_p11 }
 0x48c   :  { %1518 = shalt.err (!%p1515_p1)
}
 0x48d   :  { %856 = dma.vmem_to_hbm [thread:$0]  %s852_s0, 128, %s854_s7, [#allocation31]   ;;  %v1024_v23 = vld [vmem:[#allocation19] ss:$0 sm:$0xff] }
 0x48e   :  { %s1620_s25 = smov [#allocation33]   ;;  %s864_s15 = sshll.u32 %s1794_s8, 4  ;;  %s865_s15 = int_to_ptr.hbm [resolvable:$true] %s864_s15 }
 0x48f   :  { %s862_s27 = sshll.u32 %s1620_s25, 4  ;;  %s1531_s19 = sshra.s32 %s865_s15, 4  ;;  %s863_s27 = int_to_ptr.vmem [resolvable:$true] %s862_s27  ;;  %s1532_s19 = int_to_ptr.hbm [resolvable:$true] %s1531_s19 }
 0x490   :  { %s1533_s24 = scalar_lea.hbm %s1532_s19, 8  ;;  %s1535_s16 = scalar_lea.hbm %s1794_s8, 8 }
 0x491   :  { %p1534_p2 = scmp.ne.s32.totalorder %s1532_s19, %s1533_s24  ;;  %p1536_p3 = scmp.lt.s32.totalorder %s1532_s19, %s1794_s8 }
 0x492   :  { %p1537_p4 = scmp.lt.s32.totalorder %s1535_s16, %s1533_s24 }
 0x494   :  { %p1538_p5 = por %p1537_p4, %p1536_p3 }
 0x495   :  { %v743_v24 = vpop.f32.mrf.mxu3 }
 0x496   :  { %v744_v25 = vadd.f32 %v1024_v23, %v743_v24  ;;  %p1539_p6 = pnand %p1538_p5, %p1534_p2 }
 0x498   :  { %v746_v26 = vand.u32 2147483647, %v744_v25  ;;  %vm752_vm3 = vcmp.ge.f32.partialorder %v744_v25, 0.0 }
 0x49a   :  { %v747_v27 = vsub.f32 0.0, %v746_v26 }
 0x49c   :  { %v748_v28 = vmul.f32 1.442695, %v747_v27 }
 0x49e   :  { %1035 = vpow2.f32 %v748_v28 }
 0x4a4   :  { %v1036_v29 = vpop.eup %1035 }
 0x4a5   :  { %v750_v30 = vadd.f32 1.0, %v1036_v29 }
 0x4a7   :  { %1037 = vrcp.f32 %v750_v30 }
 0x4ad   :  { %v1038_v31 = vpop.eup %1037 }
 0x4ae   :  { %v753_v32 = vmul.f32 %v1038_v31, %v1036_v29 }
 0x4b0   :  { %v754_v33 = vsel %vm752_vm3, %v1038_v31, %v753_v32 }
 0x4b1   :  { %v755_v34 = vmax.f32 %v754_v33, 0.0 }
 0x4b3   :  { %v756_v35 = vmin.f32 %v755_v34, 1.0 }
 0x4b5   :  { %757 = vst [vmem:[#allocation33] sm:$0xff] %v756_v35 }
 0x4b6   :  { %1542 = shalt.err (!%p1539_p6)
}
 0x4b7   :  { %867 = dma.vmem_to_hbm [thread:$0]  %s863_s27, 128, %s865_s15, [#allocation34]  }
 0x4b8   :  { %1555 = dma.done.wait [#allocation4], 128  }
 0x4b9   :  { %1556 = vsyncadd [#allocation4], 4294967168 }
 0x4ba   :  { %1557 = dma.done.wait [#allocation22], 256  }
 0x4bb   :  { %1558 = vsyncadd [#allocation22], 4294967040 }
 0x4bc   :  { %1559 = dma.done.wait [#allocation25], 256  }
 0x4bd   :  { %1560 = vsyncadd [#allocation25], 4294967040 }
 0x4be   :  { %1561 = dma.done.wait [#allocation28], 256  }
 0x4bf   :  { %1562 = vsyncadd [#allocation28], 4294967040 }
 0x4c0   :  { %1563 = dma.done.wait [#allocation31], 256  }
 0x4c1   :  { %1564 = vsyncadd [#allocation31], 4294967040 }
 0x4c2   :  { %1565 = dma.done.wait [#allocation34], 128  }
 0x4c3   :  { %1566 = vsyncadd [#allocation34], 4294967168 }
 0x4c4   :  { %908 = vsyncpa [#allocation3], 1 }
 0x4c5   :  { %909 = vsyncpa [#allocation6], 1 }
 0x4c6   :  { %910 = vsyncpa [#allocation9], 1 }
 0x4c7   :  { %911 = vsyncpa [#allocation12], 1 }
 0x4c8   :  { %912 = vsyncpa [#allocation15], 1 }
 0x4c9   :  { %913 = vsyncpa [#allocation18], 1 }
 0x4ca   :  { %914 = vsyncpa [#allocation4], 1 }
 0x4cb   :  { %915 = vsyncpa [#allocation22], 1 }
 0x4cc   :  { %916 = vsyncpa [#allocation25], 1 }
 0x4cd   :  { %917 = vsyncpa [#allocation28], 1 }
 0x4ce   :  { %918 = vsyncpa [#allocation31], 1 }
 0x4cf   :  { %919 = vsyncpa [#allocation34], 1 }

</bundles_post_ra>
